<compile_context>
chip_gen: v5e
topology: v5e:2x2
jax: 0.10.0
libtpu: 0.0.40
codegen_flags: <defaults>
</compile_context>

<pallas_src>
import numpy as np
import jax
import jax.numpy as jnp
from jax.experimental import pallas as pl
from jax.experimental.pallas import tpu as pltpu

# Matcher hyper-parameters (HungarianMatcher.__init__ defaults)
COST_CLASS = 1.0
COST_BBOX = 1.0
COST_GIOU = 1.0
COST_DICE = 1.0
COST_MASK = 1.0
ALPHA = 0.25
GAMMA = 2.0

LANE = 128                              # NT lane padding (keep at 128: kernel is VPU/EUP-bound, not MXU-bound)
VMEM_BUDGET_BYTES = 48 * 1024 * 1024    # per-step working-set target (sized for v7x's 64 MiB physical VMEM)
VMEM_LIMIT_BYTES = 56 * 1024 * 1024     # explicit scoped-VMEM limit (defaults: 16 MiB v5e / 32 MiB v6e-v7x)


def _round_up(x, m):
    return ((x + m - 1) // m) * m


def _scale(w, t):
    # Fold unit-valued cost weights at trace time (skips a full [TP, NTp] VPU multiply pass each).
    return t if w == 1.0 else w * t


def _softplus(x):
    # Stable softplus; reference-only (the kernel uses softplus(x) == -log1p(-sigmoid(x)) instead).
    return jnp.maximum(x, 0.0) + jnp.log1p(jnp.exp(-jnp.abs(x)))


def _matcher_cost_kernel(logits_ref, bbox_ref, mask_ref,
                         onehot_ref, tgt_aux_ref, tgt_mask_t_ref,
                         c_ref):
    # ---------------- classification (focal-style) cost ----------------
    logits = logits_ref[...]                                   # [TP, C] f32
    m = jnp.max(logits, axis=-1, keepdims=True)
    e = jnp.exp(logits - m)
    # exact reciprocal on the [TP,1] row-sum: moves the EUP divide off the [TP,C] tensor
    prob = e * pl.reciprocal(jnp.sum(e, axis=-1, keepdims=True), approx=False)
    one_m = 1.0 - prob
    # GAMMA == 2.0 -> explicit multiplies (guaranteed VPU). Logs keep the reference's +1e-8 epsilon
    # (log-softmax form would change semantics for very confident predictions).
    neg_cost = (1.0 - ALPHA) * (prob * prob) * (-jnp.log(one_m + 1e-8))
    pos_cost = ALPHA * (one_m * one_m) * (-jnp.log(prob + 1e-8))
    # (pos - neg)[:, tgt_ids] expressed as a bf16 MXU matmul with the one-hot matrix ({0,1} exact in bf16).
    cost_class = jnp.dot((pos_cost - neg_cost).astype(jnp.bfloat16), onehot_ref[...],
                         preferred_element_type=jnp.float32)   # [TP, NTp] f32 accumulation

    # ---------------- bbox L1 + 1-D GIoU cost ----------------
    ob = bbox_ref[...]                                         # [TP, 4] = (c, l, x0, x1)
    oc, ol = ob[:, 0:1], ob[:, 1:2]
    ox0, ox1 = ob[:, 2:3], ob[:, 3:4]
    ta = tgt_aux_ref[...]                                      # [8, NTp]
    tc, tl = ta[0:1, :], ta[1:2, :]
    tx0, tx1 = ta[2:3, :], ta[3:4, :]
    tgt_mask_sum = ta[4:5, :]                                  # precomputed sum(tgt_mask, L)

    cost_bbox = jnp.abs(oc - tc) + jnp.abs(ol - tl)            # cdist p=1, [TP, NTp]

    inter = jnp.maximum(jnp.minimum(ox1, tx1) - jnp.maximum(ox0, tx0), 0.0)
    union = jnp.maximum(ol + tl - inter, 1e-7)                 # eps-clamp: approx reciprocal stays finite
    enclose = jnp.maximum(jnp.maximum(ox1, tx1) - jnp.minimum(ox0, tx0), 1e-7)
    # NOTE: keep two approx reciprocals (VPU-friendly); merge into a single reciprocal of union*enclose
    # only if a bundle dump shows EUP (not VALU) saturating.
    iou = inter * pl.reciprocal(union, approx=True)
    # cost_giou = 1 - giou_var; the constant 1 is folded into the final accumulation
    giou_var = iou + union * pl.reciprocal(enclose, approx=True)

    # ---------------- mask BCE + dice cost ----------------
    xm = mask_ref[...].astype(jnp.float32)                     # bf16 HBM -> f32 compute
    x = jax.nn.sigmoid(xm)                                     # torch quirk: sigmoid output fed as BCE "logits"
    s = jax.nn.sigmoid(x)                                      # dice applies sigmoid again (matches reference)
    inv_l = 1.0 / x.shape[1]
    # softplus(x) = -log(1 - sigmoid(x)) = -log1p(-s): reuses s, drops one [TP, L] EUP exp pass
    ce_neg_sum = -jnp.sum(jnp.log1p(-s), axis=-1, keepdims=True)   # [TP, 1]

    tm_t = tgt_mask_t_ref[...]                                 # [L, NTp] bf16, last column = all-ones
    # back-to-back bf16 dots share the resident tm_t RHS on the MXU (f32 accumulation)
    x_dot = jnp.dot(x.astype(jnp.bfloat16), tm_t, preferred_element_type=jnp.float32)   # [TP, NTp]
    s_dot = jnp.dot(s.astype(jnp.bfloat16), tm_t, preferred_element_type=jnp.float32)   # [TP, NTp]

    # softplus identity: (sp(-x) @ tm + sp(x) @ (1 - tm)) / L == (rowsum(sp(x)) - x @ tm) / L
    cost_mask = (ce_neg_sum - x_dot) * inv_l
    # rowsum(s) read off the MXU result via the all-ones padding column (no [TP, L] XLU reduction)
    s_rowsum = s_dot[:, -1:]                                   # [TP, 1]
    denom = s_rowsum + tgt_mask_sum + 1.0
    # cost_dice = 1 - dice_var; the constant 1 is folded into the final accumulation
    dice_var = (2.0 * s_dot + 1.0) * pl.reciprocal(denom, approx=True)

    # ---------------- weighted sum (unit weights + giou/dice constants folded at trace time) ----------
    const = COST_GIOU + COST_DICE
    c_ref[...] = (_scale(COST_BBOX, cost_bbox) + _scale(COST_CLASS, cost_class)
                  + _scale(COST_MASK, cost_mask)
                  - _scale(COST_GIOU, giou_var) - _scale(COST_DICE, dice_var)
                  + const)


def _choose_tile_p(P, nc, L, nt_pad):
    """Row-tile selection: >=2 grid steps, minimal row padding, explicit per-step VMEM budget."""
    def vmem_estimate(tp):
        row_inputs = 2 * tp * (nc * 4 + L * 2 + LANE * 4)   # double-buffered: logits f32, masks bf16, bbox lane-padded
        out = 2 * tp * nt_pad * 4                           # double-buffered f32 output tile
        inter = 10 * tp * nt_pad * 4                        # live f32 [TP, NTp] elementwise intermediates
        resident = (nc + L) * nt_pad * 2 + 8 * nt_pad * 4   # resident targets: onehot / tgt_mask_t bf16, tgt_aux f32
        return row_inputs + out + inter + resident

    max_tile = 256 if (nt_pad >= 512 or L >= 2048) else 512   # shrink the cap for wide NT / long L (v7x 64 MiB VMEM)
    ntiles = max(2, pl.cdiv(max(P, 1), max_tile))             # >=2 steps: DMA/compute overlap + 2-TC split on v7x
    tile_p = _round_up(pl.cdiv(max(P, 1), ntiles), 16)        # 16-row granularity (bf16 mask sublane packing)
    while tile_p > 16 and vmem_estimate(tile_p) > VMEM_BUDGET_BYTES:
        tile_p = _round_up(pl.cdiv(tile_p, 2), 16)
    return tile_p


def matcher_cost_pallas(logits, bbox, masks, onehot_pad, tgt_aux_pad, tgt_mask_t_pad):
    """Returns the padded [P_pad, NT_pad] cost matrix; valid region is [:P, :NT]."""
    P, nc = logits.shape
    L = masks.shape[1]
    nt_pad = onehot_pad.shape[1]

    tile_p = _choose_tile_p(P, nc, L, nt_pad)
    p_pad = _round_up(max(P, 1), tile_p)

    logits = logits.astype(jnp.float32)
    masks = masks.astype(jnp.bfloat16)           # bf16 in HBM: halves the DMA of the largest per-row input

    # precompute box corners in the wrapper (single padded aux array per side)
    oc, ol = bbox[:, 0:1].astype(jnp.float32), bbox[:, 1:2].astype(jnp.float32)
    bbox_aux = jnp.concatenate([oc, ol, oc - 0.5 * ol, oc + 0.5 * ol], axis=1)  # [P, 4]

    if p_pad != P:
        pad = p_pad - P
        logits = jnp.pad(logits, ((0, pad), (0, 0)))
        masks = jnp.pad(masks, ((0, pad), (0, 0)))
        # benign unit box in padded rows keeps the giou math well-behaved (padded rows are sliced off on host)
        pad_box = jnp.broadcast_to(jnp.asarray([0.5, 1.0, 0.0, 1.0], jnp.float32), (pad, 4))
        bbox_aux = jnp.concatenate([bbox_aux, pad_box], axis=0)

    # TODO(synk): for very long temporal axes L, add a second "arbitrary" grid axis over L with VMEM
    # accumulators for x_dot/s_dot/ce_neg_sum so the masks / tgt_mask_t tiles stay bounded on v7x.
    def build(single_buffer_targets):
        tgt_kwargs = {"pipeline_mode": pl.Buffered(1)} if single_buffer_targets else {}
        return pl.pallas_call(
            _matcher_cost_kernel,
            out_shape=jax.ShapeDtypeStruct((p_pad, nt_pad), jnp.float32),
            grid=(p_pad // tile_p,),
            in_specs=[
                pl.BlockSpec((tile_p, nc), lambda i: (i, 0)),
                pl.BlockSpec((tile_p, 4), lambda i: (i, 0)),
                pl.BlockSpec((tile_p, L), lambda i: (i, 0)),
                # target-side arrays stay VMEM-resident; single-buffered (DMA'd once) to save VMEM on v7x
                pl.BlockSpec((nc, nt_pad), lambda i: (0, 0), **tgt_kwargs),
                pl.BlockSpec((8, nt_pad), lambda i: (0, 0), **tgt_kwargs),
                pl.BlockSpec((L, nt_pad), lambda i: (0, 0), **tgt_kwargs),
            ],
            out_specs=pl.BlockSpec((tile_p, nt_pad), lambda i: (i, 0)),
            compiler_params=pltpu.CompilerParams(
                dimension_semantics=("parallel",),
                vmem_limit_bytes=VMEM_LIMIT_BYTES),
        )

    args = (logits, bbox_aux, masks, onehot_pad, tgt_aux_pad, tgt_mask_t_pad)
    try:
        return build(True)(*args)
    except Exception:
        # pipeline_mode=pl.Buffered(1) not supported on this jax version -> default double buffering
        return build(False)(*args)


# ---------------- host/wrapper preprocessing ----------------
def _prepare_predictions(outputs):
    bs, nq, nc = outputs["pred_logits"].shape
    L = outputs["pred_masks"].shape[1]          # pred_masks: [bs, mask_len, num_queries]
    logits = outputs["pred_logits"].reshape(bs * nq, nc).astype(jnp.float32)
    bbox = outputs["pred_boxes"].reshape(bs * nq, 2).astype(jnp.float32)
    masks = jnp.transpose(outputs["pred_masks"], (0, 2, 1)).reshape(bs * nq, L).astype(jnp.float32)
    return logits, bbox, masks, bs, nq, nc, L


def _prepare_targets(targets, num_classes, mask_len):
    tgt_ids = np.concatenate([np.asarray(t["labels"]) for t in targets]).astype(np.int64)
    tgt_bbox = np.concatenate([np.asarray(t["boxes"]) for t in targets], axis=0).astype(np.float32)
    tgt_lens = [int(np.asarray(t["labels"]).shape[0]) for t in targets]
    nt = int(tgt_ids.shape[0])

    frame_gts = []
    for t in targets:
        fl = np.asarray(t["frame_labels"])
        pad = np.zeros((mask_len - fl.shape[0],), dtype=fl.dtype)
        frame_gts.append(np.concatenate([fl, pad]))
    expand = []
    for ft, n in zip(frame_gts, tgt_lens):
        expand += [ft] * n
    expand = np.stack(expand)                                        # [NT, L]
    tgt_mask = (expand == tgt_ids[:, None]).astype(np.float32)       # [NT, L]

    # lane-dense NT; the +1 guarantees at least one padding column for the all-ones "rowsum(s)" trick
    nt_pad = _round_up(nt + 1, LANE)

    onehot_pad = np.zeros((num_classes, nt_pad), np.float32)
    onehot_pad[:, :nt] = (np.arange(num_classes)[:, None] == tgt_ids[None, :])

    tc, tl = tgt_bbox[:, 0], tgt_bbox[:, 1]
    tgt_aux_pad = np.zeros((8, nt_pad), np.float32)
    # benign unit box in padded columns keeps the giou math well-behaved (padded cols are sliced off on host)
    tgt_aux_pad[0, :] = 0.5
    tgt_aux_pad[1, :] = 1.0
    tgt_aux_pad[3, :] = 1.0
    tgt_aux_pad[0, :nt] = tc
    tgt_aux_pad[1, :nt] = tl
    tgt_aux_pad[2, :nt] = tc - 0.5 * tl
    tgt_aux_pad[3, :nt] = tc + 0.5 * tl
    tgt_aux_pad[4, :nt] = tgt_mask.sum(axis=1)

    tgt_mask_t_pad = np.zeros((mask_len, nt_pad), np.float32)
    tgt_mask_t_pad[:, :nt] = tgt_mask.T
    tgt_mask_t_pad[:, nt_pad - 1] = 1.0        # all-ones column -> rowsum(sigmoid(x)) read off the MXU result

    sizes = [int(np.asarray(t["boxes"]).shape[0]) for t in targets]
    return dict(tgt_ids=tgt_ids, tgt_bbox=tgt_bbox, tgt_mask=tgt_mask, sizes=sizes, nt=nt,
                onehot_pad=jnp.asarray(onehot_pad, dtype=jnp.bfloat16),       # {0,1}: exact in bf16
                tgt_aux_pad=jnp.asarray(tgt_aux_pad),
                tgt_mask_t_pad=jnp.asarray(tgt_mask_t_pad, dtype=jnp.bfloat16))


# ---------------- pure-JAX reference (test-only; mirrors the PyTorch formulas in f32) ----------------
def matcher_cost_ref(logits, bbox, masks, tgt_ids, tgt_bbox, tgt_mask):
    prob = jax.nn.softmax(logits, axis=-1)
    neg = (1.0 - ALPHA) * prob ** GAMMA * (-jnp.log(1.0 - prob + 1e-8))
    pos = ALPHA * (1.0 - prob) ** GAMMA * (-jnp.log(prob + 1e-8))
    tgt_ids = jnp.asarray(tgt_ids)
    cost_class = pos[:, tgt_ids] - neg[:, tgt_ids]

    tgt_bbox = jnp.asarray(tgt_bbox)
    oc, ol = bbox[:, 0:1], bbox[:, 1:2]
    tc, tl = tgt_bbox[None, :, 0], tgt_bbox[None, :, 1]
    cost_bbox = jnp.abs(oc - tc) + jnp.abs(ol - tl)
    ox0, ox1 = oc - 0.5 * ol, oc + 0.5 * ol
    tx0, tx1 = tc - 0.5 * tl, tc + 0.5 * tl
    inter = jnp.maximum(jnp.minimum(ox1, tx1) - jnp.maximum(ox0, tx0), 0.0)
    union = ol + tl - inter
    enclose = jnp.maximum(ox1, tx1) - jnp.minimum(ox0, tx0)
    cost_giou = -(inter / union - (enclose - union) / enclose)

    L = masks.shape[1]
    tgt_mask = jnp.asarray(tgt_mask)                         # [NT, L]
    out_mask = jax.nn.sigmoid(masks)
    ce_pos = _softplus(-out_mask)
    ce_neg = _softplus(out_mask)
    cost_mask = (ce_pos / L) @ tgt_mask.T + (ce_neg / L) @ (1.0 - tgt_mask).T
    s = jax.nn.sigmoid(out_mask)
    numerator = 2.0 * (s @ tgt_mask.T)
    denominator = jnp.sum(s, -1, keepdims=True) + jnp.sum(tgt_mask, -1)[None, :]
    cost_dice = 1.0 - (numerator + 1.0) / (denominator + 1.0)

    return (COST_BBOX * cost_bbox + COST_CLASS * cost_class + COST_GIOU * cost_giou
            + COST_DICE * cost_dice + COST_MASK * cost_mask)


# ---------------- host-side assignment ----------------
def _linear_sum_assignment(cost):
    try:
        from scipy.optimize import linear_sum_assignment as lsa
        r, c = lsa(cost)
        return np.asarray(r, np.int64), np.asarray(c, np.int64)
    except Exception:
        # TODO(synk): Hungarian algorithm is sequential/combinatorial with no Pallas equivalent; greedy fallback.
        cost = np.array(cost, dtype=np.float64, copy=True)
        n = min(cost.shape)
        rows, cols = [], []
        for _ in range(n):
            r, c = np.unravel_index(np.argmin(cost), cost.shape)
            rows.append(r); cols.append(c)
            cost[r, :] = np.inf; cost[:, c] = np.inf
        order = np.argsort(rows)
        return np.asarray(rows, np.int64)[order], np.asarray(cols, np.int64)[order]


def hungarian_matcher_forward(outputs, targets):
    logits, bbox, masks, bs, nq, nc, L = _prepare_predictions(outputs)
    tg = _prepare_targets(targets, nc, L)
    nt = tg["nt"]

    # hot path: pairwise cost matrix on TPU (lane-dense padded output)
    C_pad = matcher_cost_pallas(logits, bbox, masks,
                                tg["onehot_pad"], tg["tgt_aux_pad"], tg["tgt_mask_t_pad"])
    C_pad = jax.block_until_ready(C_pad)

    # host: slice the valid rows/columns, then per-batch Hungarian assignment
    C_np = np.asarray(jax.device_get(C_pad))[:bs * nq, :nt].reshape(bs, nq, nt)
    sizes = tg["sizes"]
    offs = np.concatenate([[0], np.cumsum(sizes)])
    indices, rl_indices = [], []
    m2o_rate = 4
    for i, sz in enumerate(sizes):
        sub = C_np[i, :, offs[i]:offs[i] + sz]
        indices.append(_linear_sum_assignment(sub))
        ri, rj = _linear_sum_assignment(np.concatenate([sub] * m2o_rate, axis=-1))
        rl_indices.append((ri, (rj % sz).astype(np.int64)))
    return (indices, rl_indices), C_np


if __name__ == "__main__":
    key = jax.random.PRNGKey(0)
    bs, nq, nc, L = 2, 8, 4, 16
    k1, k2, k3, k4 = jax.random.split(key, 4)

    pred_logits = jax.random.normal(k1, (bs, nq, nc), jnp.float32)
    centers = jax.random.uniform(k2, (bs, nq, 1), minval=0.1, maxval=0.9)
    lengths = jax.random.uniform(k3, (bs, nq, 1), minval=0.05, maxval=0.4)
    pred_boxes = jnp.concatenate([centers, lengths], axis=-1)
    pred_masks = jax.random.normal(k4, (bs, L, nq), jnp.float32)   # [bs, mask_len, num_queries]

    outputs = {"pred_logits": pred_logits, "pred_boxes": pred_boxes, "pred_masks": pred_masks}
    targets = [
        dict(labels=jnp.array([1, 2, 3], jnp.int32),
             boxes=jnp.array([[0.2, 0.10], [0.5, 0.30], [0.8, 0.15]], jnp.float32),
             frame_labels=jnp.array([1, 1, 1, 2, 2, 2, 2, 3, 3, 0, 0, 0], jnp.int32)),
        dict(labels=jnp.array([2, 1], jnp.int32),
             boxes=jnp.array([[0.3, 0.20], [0.7, 0.25]], jnp.float32),
             frame_labels=jnp.array([2, 2, 2, 2, 1, 1, 1, 1, 0, 0], jnp.int32)),
    ]

    (indices, rl_indices), C_np = hungarian_matcher_forward(outputs, targets)

    # correctness check (test-only; not part of the production hot path)
    logits, bbox, masks, bs_, nq_, nc_, L_ = _prepare_predictions(outputs)
    tg = _prepare_targets(targets, nc_, L_)
    C_ref = matcher_cost_ref(logits, bbox, masks, tg["tgt_ids"], tg["tgt_bbox"],
                             np.asarray(tg["tgt_mask"], np.float32))
    C_ref = np.asarray(jax.block_until_ready(C_ref)).reshape(bs_, nq_, tg["nt"])

    # bf16 matmul operands + approx (EUP) reciprocals -> slightly relaxed tolerance vs the f32 reference;
    # near-tie cost entries may flip assignment order (acceptable for matching, documented here).
    if not np.allclose(C_np, C_ref, rtol=1e-2, atol=2e-2):
        raise AssertionError("Pallas cost matrix does not match reference; max err = %g"
                             % float(np.max(np.abs(C_np - C_ref))))
    print("KERNEL_OK")
</pallas_src>

<mosaic_0001>
module attributes {stable_mosaic.version = 11 : i64} {
  func.func @_matcher_cost_kernel(%arg0: i32, %arg1: memref<16x4xf32, #tpu.memory_space<vmem>>, %arg2: memref<16x4xf32, #tpu.memory_space<vmem>>, %arg3: memref<16x16xbf16, #tpu.memory_space<vmem>>, %arg4: memref<4x128xbf16, #tpu.memory_space<vmem>>, %arg5: memref<8x128xf32, #tpu.memory_space<vmem>>, %arg6: memref<16x128xbf16, #tpu.memory_space<vmem>>, %arg7: memref<16x128xf32, #tpu.memory_space<vmem>>) attributes {dimension_semantics = [#tpu.dimension_semantics<parallel>], iteration_bounds = array<i64: 1>, scalar_prefetch = 0 : i64, scratch_operands = 0 : i64, tpu.core_type = #tpu.core_type<tc>, window_params = [{transform_indices = @transform_0, window_bounds = array<i64: 16, 4>}, {transform_indices = @transform_1, window_bounds = array<i64: 16, 4>}, {transform_indices = @transform_2, window_bounds = array<i64: 16, 16>}, {pipeline_mode = #tpu.pipeline_mode<synchronous>, transform_indices = @transform_3, window_bounds = array<i64: 4, 128>}, {pipeline_mode = #tpu.pipeline_mode<synchronous>, transform_indices = @transform_4, window_bounds = array<i64: 8, 128>}, {pipeline_mode = #tpu.pipeline_mode<synchronous>, transform_indices = @transform_5, window_bounds = array<i64: 16, 128>}, {transform_indices = @transform_6, window_bounds = array<i64: 16, 128>}]} {
    %c0 = arith.constant 0 : index
    %c0_0 = arith.constant 0 : index
    %0 = vector.load %arg1[%c0, %c0_0] : memref<16x4xf32, #tpu.memory_space<vmem>>, vector<16x4xf32>
    %cst = arith.constant dense<0xFF800000> : vector<16xf32>
    %1 = vector.multi_reduction <maximumf>, %0, %cst [1] : vector<16x4xf32> to vector<16xf32>
    %2 = vector.shape_cast %1 : vector<16xf32> to vector<16x1xf32>
    %3 = vector.broadcast %2 : vector<16x1xf32> to vector<16x4xf32>
    %4 = arith.subf %0, %3 : vector<16x4xf32>
    %5 = math.exp %4 : vector<16x4xf32>
    %cst_1 = arith.constant dense<0.000000e+00> : vector<16xf32>
    %6 = vector.multi_reduction <add>, %5, %cst_1 [1] : vector<16x4xf32> to vector<16xf32>
    %7 = vector.shape_cast %6 : vector<16xf32> to vector<16x1xf32>
    %8 = tpu.reciprocal %7 : vector<16x1xf32> -> vector<16x1xf32>
    %9 = vector.broadcast %8 : vector<16x1xf32> to vector<16x4xf32>
    %10 = arith.mulf %5, %9 : vector<16x4xf32>
    %cst_2 = arith.constant 1.000000e+00 : f32
    %11 = vector.broadcast %cst_2 : f32 to vector<16x4xf32>
    %12 = arith.subf %11, %10 : vector<16x4xf32>
    %13 = arith.mulf %10, %10 : vector<16x4xf32>
    %cst_3 = arith.constant 7.500000e-01 : f32
    %14 = vector.broadcast %cst_3 : f32 to vector<16x4xf32>
    %15 = arith.mulf %14, %13 : vector<16x4xf32>
    %cst_4 = arith.constant 9.99999993E-9 : f32
    %16 = vector.broadcast %cst_4 : f32 to vector<16x4xf32>
    %17 = arith.addf %12, %16 : vector<16x4xf32>
    %18 = math.log %17 : vector<16x4xf32>
    %cst_5 = arith.constant 0.000000e+00 : f32
    %19 = vector.broadcast %cst_5 : f32 to vector<16x4xf32>
    %20 = arith.subf %19, %18 : vector<16x4xf32>
    %21 = arith.mulf %15, %20 : vector<16x4xf32>
    %22 = arith.mulf %12, %12 : vector<16x4xf32>
    %cst_6 = arith.constant 2.500000e-01 : f32
    %23 = vector.broadcast %cst_6 : f32 to vector<16x4xf32>
    %24 = arith.mulf %23, %22 : vector<16x4xf32>
    %cst_7 = arith.constant 9.99999993E-9 : f32
    %25 = vector.broadcast %cst_7 : f32 to vector<16x4xf32>
    %26 = arith.addf %10, %25 : vector<16x4xf32>
    %27 = math.log %26 : vector<16x4xf32>
    %cst_8 = arith.constant 0.000000e+00 : f32
    %28 = vector.broadcast %cst_8 : f32 to vector<16x4xf32>
    %29 = arith.subf %28, %27 : vector<16x4xf32>
    %30 = arith.mulf %24, %29 : vector<16x4xf32>
    %31 = arith.subf %30, %21 : vector<16x4xf32>
    %32 = arith.truncf %31 : vector<16x4xf32> to vector<16x4xbf16>
    %c0_9 = arith.constant 0 : index
    %c0_10 = arith.constant 0 : index
    %33 = vector.load %arg4[%c0_9, %c0_10] : memref<4x128xbf16, #tpu.memory_space<vmem>>, vector<4x128xbf16>
    %cst_11 = arith.constant dense<0.000000e+00> : vector<16x128xf32>
    %34 = tpu.matmul %32, %33, %cst_11 {dimension_numbers = #tpu.dot_dimension_numbers<[1], [0], [0], [1], [0, 0, 1, 1], [], []>} : vector<16x4xbf16>, vector<4x128xbf16>, vector<16x128xf32> -> vector<16x128xf32>
    %c0_12 = arith.constant 0 : index
    %c0_13 = arith.constant 0 : index
    %35 = vector.load %arg2[%c0_12, %c0_13] : memref<16x4xf32, #tpu.memory_space<vmem>>, vector<16x4xf32>
    %36 = vector.extract_strided_slice %35 {offsets = [0, 0], sizes = [16, 1], strides = [1, 1]} : vector<16x4xf32> to vector<16x1xf32>
    %37 = vector.extract_strided_slice %35 {offsets = [0, 1], sizes = [16, 1], strides = [1, 1]} : vector<16x4xf32> to vector<16x1xf32>
    %38 = vector.extract_strided_slice %35 {offsets = [0, 2], sizes = [16, 1], strides = [1, 1]} : vector<16x4xf32> to vector<16x1xf32>
    %39 = vector.extract_strided_slice %35 {offsets = [0, 3], sizes = [16, 1], strides = [1, 1]} : vector<16x4xf32> to vector<16x1xf32>
    %c0_14 = arith.constant 0 : index
    %c0_15 = arith.constant 0 : index
    %40 = vector.load %arg5[%c0_14, %c0_15] : memref<8x128xf32, #tpu.memory_space<vmem>>, vector<8x128xf32>
    %41 = vector.extract_strided_slice %40 {offsets = [0, 0], sizes = [1, 128], strides = [1, 1]} : vector<8x128xf32> to vector<1x128xf32>
    %42 = vector.extract_strided_slice %40 {offsets = [1, 0], sizes = [1, 128], strides = [1, 1]} : vector<8x128xf32> to vector<1x128xf32>
    %43 = vector.extract_strided_slice %40 {offsets = [2, 0], sizes = [1, 128], strides = [1, 1]} : vector<8x128xf32> to vector<1x128xf32>
    %44 = vector.extract_strided_slice %40 {offsets = [3, 0], sizes = [1, 128], strides = [1, 1]} : vector<8x128xf32> to vector<1x128xf32>
    %45 = vector.extract_strided_slice %40 {offsets = [4, 0], sizes = [1, 128], strides = [1, 1]} : vector<8x128xf32> to vector<1x128xf32>
    %46 = vector.broadcast %36 : vector<16x1xf32> to vector<16x128xf32>
    %47 = vector.broadcast %41 : vector<1x128xf32> to vector<16x128xf32>
    %48 = arith.subf %46, %47 : vector<16x128xf32>
    %49 = math.absf %48 : vector<16x128xf32>
    %50 = vector.broadcast %37 : vector<16x1xf32> to vector<16x128xf32>
    %51 = vector.broadcast %42 : vector<1x128xf32> to vector<16x128xf32>
    %52 = arith.subf %50, %51 : vector<16x128xf32>
    %53 = math.absf %52 : vector<16x128xf32>
    %54 = arith.addf %49, %53 : vector<16x128xf32>
    %55 = vector.broadcast %39 : vector<16x1xf32> to vector<16x128xf32>
    %56 = vector.broadcast %44 : vector<1x128xf32> to vector<16x128xf32>
    %57 = arith.minimumf %55, %56 : vector<16x128xf32>
    %58 = vector.broadcast %38 : vector<16x1xf32> to vector<16x128xf32>
    %59 = vector.broadcast %43 : vector<1x128xf32> to vector<16x128xf32>
    %60 = arith.maximumf %58, %59 : vector<16x128xf32>
    %61 = arith.subf %57, %60 : vector<16x128xf32>
    %cst_16 = arith.constant 0.000000e+00 : f32
    %62 = vector.broadcast %cst_16 : f32 to vector<16x128xf32>
    %63 = arith.maximumf %61, %62 : vector<16x128xf32>
    %64 = vector.broadcast %37 : vector<16x1xf32> to vector<16x128xf32>
    %65 = vector.broadcast %42 : vector<1x128xf32> to vector<16x128xf32>
    %66 = arith.addf %64, %65 : vector<16x128xf32>
    %67 = arith.subf %66, %63 : vector<16x128xf32>
    %cst_17 = arith.constant 1.000000e-07 : f32
    %68 = vector.broadcast %cst_17 : f32 to vector<16x128xf32>
    %69 = arith.maximumf %67, %68 : vector<16x128xf32>
    %70 = vector.broadcast %39 : vector<16x1xf32> to vector<16x128xf32>
    %71 = vector.broadcast %44 : vector<1x128xf32> to vector<16x128xf32>
    %72 = arith.maximumf %70, %71 : vector<16x128xf32>
    %73 = vector.broadcast %38 : vector<16x1xf32> to vector<16x128xf32>
    %74 = vector.broadcast %43 : vector<1x128xf32> to vector<16x128xf32>
    %75 = arith.minimumf %73, %74 : vector<16x128xf32>
    %76 = arith.subf %72, %75 : vector<16x128xf32>
    %cst_18 = arith.constant 1.000000e-07 : f32
    %77 = vector.broadcast %cst_18 : f32 to vector<16x128xf32>
    %78 = arith.maximumf %76, %77 : vector<16x128xf32>
    %79 = tpu.reciprocal %69 {approx = true} : vector<16x128xf32> -> vector<16x128xf32>
    %80 = arith.mulf %63, %79 : vector<16x128xf32>
    %81 = tpu.reciprocal %78 {approx = true} : vector<16x128xf32> -> vector<16x128xf32>
    %82 = arith.mulf %69, %81 : vector<16x128xf32>
    %83 = arith.addf %80, %82 : vector<16x128xf32>
    %c0_19 = arith.constant 0 : index
    %c0_20 = arith.constant 0 : index
    %84 = vector.load %arg3[%c0_19, %c0_20] : memref<16x16xbf16, #tpu.memory_space<vmem>>, vector<16x16xbf16>
    %85 = arith.extf %84 : vector<16x16xbf16> to vector<16x16xf32>
    %86 = arith.negf %85 : vector<16x16xf32>
    %87 = math.exp %86 : vector<16x16xf32>
    %cst_21 = arith.constant 1.000000e+00 : f32
    %88 = vector.broadcast %cst_21 : f32 to vector<16x16xf32>
    %89 = arith.addf %88, %87 : vector<16x16xf32>
    %90 = arith.divf %88, %89 : vector<16x16xf32>
    %91 = arith.negf %90 : vector<16x16xf32>
    %92 = math.exp %91 : vector<16x16xf32>
    %cst_22 = arith.constant 1.000000e+00 : f32
    %93 = vector.broadcast %cst_22 : f32 to vector<16x16xf32>
    %94 = arith.addf %93, %92 : vector<16x16xf32>
    %95 = arith.divf %93, %94 : vector<16x16xf32>
    %cst_23 = arith.constant 0.000000e+00 : f32
    %96 = vector.broadcast %cst_23 : f32 to vector<16x16xf32>
    %97 = arith.subf %96, %95 : vector<16x16xf32>
    %98 = math.log1p %97 : vector<16x16xf32>
    %cst_24 = arith.constant dense<0.000000e+00> : vector<16xf32>
    %99 = vector.multi_reduction <add>, %98, %cst_24 [1] : vector<16x16xf32> to vector<16xf32>
    %100 = vector.shape_cast %99 : vector<16xf32> to vector<16x1xf32>
    %cst_25 = arith.constant 0.000000e+00 : f32
    %101 = vector.broadcast %cst_25 : f32 to vector<16x1xf32>
    %102 = arith.subf %101, %100 : vector<16x1xf32>
    %c0_26 = arith.constant 0 : index
    %c0_27 = arith.constant 0 : index
    %103 = vector.load %arg6[%c0_26, %c0_27] : memref<16x128xbf16, #tpu.memory_space<vmem>>, vector<16x128xbf16>
    %104 = arith.truncf %90 : vector<16x16xf32> to vector<16x16xbf16>
    %cst_28 = arith.constant dense<0.000000e+00> : vector<16x128xf32>
    %105 = tpu.matmul %104, %103, %cst_28 {dimension_numbers = #tpu.dot_dimension_numbers<[1], [0], [0], [1], [0, 0, 1, 1], [], []>} : vector<16x16xbf16>, vector<16x128xbf16>, vector<16x128xf32> -> vector<16x128xf32>
    %106 = arith.truncf %95 : vector<16x16xf32> to vector<16x16xbf16>
    %cst_29 = arith.constant dense<0.000000e+00> : vector<16x128xf32>
    %107 = tpu.matmul %106, %103, %cst_29 {dimension_numbers = #tpu.dot_dimension_numbers<[1], [0], [0], [1], [0, 0, 1, 1], [], []>} : vector<16x16xbf16>, vector<16x128xbf16>, vector<16x128xf32> -> vector<16x128xf32>
    %108 = vector.broadcast %102 : vector<16x1xf32> to vector<16x128xf32>
    %109 = arith.subf %108, %105 : vector<16x128xf32>
    %cst_30 = arith.constant 6.250000e-02 : f32
    %110 = vector.broadcast %cst_30 : f32 to vector<16x128xf32>
    %111 = arith.mulf %109, %110 : vector<16x128xf32>
    %112 = vector.extract_strided_slice %107 {offsets = [0, 127], sizes = [16, 1], strides = [1, 1]} : vector<16x128xf32> to vector<16x1xf32>
    %113 = vector.broadcast %112 : vector<16x1xf32> to vector<16x128xf32>
    %114 = vector.broadcast %45 : vector<1x128xf32> to vector<16x128xf32>
    %115 = arith.addf %113, %114 : vector<16x128xf32>
    %cst_31 = arith.constant 1.000000e+00 : f32
    %116 = vector.broadcast %cst_31 : f32 to vector<16x128xf32>
    %117 = arith.addf %115, %116 : vector<16x128xf32>
    %cst_32 = arith.constant 2.000000e+00 : f32
    %118 = vector.broadcast %cst_32 : f32 to vector<16x128xf32>
    %119 = arith.mulf %118, %107 : vector<16x128xf32>
    %cst_33 = arith.constant 1.000000e+00 : f32
    %120 = vector.broadcast %cst_33 : f32 to vector<16x128xf32>
    %121 = arith.addf %119, %120 : vector<16x128xf32>
    %122 = tpu.reciprocal %117 {approx = true} : vector<16x128xf32> -> vector<16x128xf32>
    %123 = arith.mulf %121, %122 : vector<16x128xf32>
    %124 = arith.addf %54, %34 : vector<16x128xf32>
    %125 = arith.addf %124, %111 : vector<16x128xf32>
    %126 = arith.subf %125, %83 : vector<16x128xf32>
    %127 = arith.subf %126, %123 : vector<16x128xf32>
    %cst_34 = arith.constant 2.000000e+00 : f32
    %128 = vector.broadcast %cst_34 : f32 to vector<16x128xf32>
    %129 = arith.addf %127, %128 : vector<16x128xf32>
    %c0_35 = arith.constant 0 : index
    %c0_36 = arith.constant 0 : index
    %130 = vector.load %arg7[%c0_35, %c0_36] : memref<16x128xf32, #tpu.memory_space<vmem>>, vector<16x128xf32>
    tpu.vector_store %arg7[%c0_35, %c0_36], %129 {strides = array<i32>} : memref<16x128xf32, #tpu.memory_space<vmem>>, vector<16x128xf32>,
    return
  }
  func.func @transform_0(%arg0: i32) -> (i32, i32) {
    %c0_i32 = arith.constant 0 : i32
    %c0_i32_0 = arith.constant 0 : i32
    return %arg0, %c0_i32 : i32, i32
  }
  func.func @transform_1(%arg0: i32) -> (i32, i32) {
    %c0_i32 = arith.constant 0 : i32
    %c0_i32_0 = arith.constant 0 : i32
    return %arg0, %c0_i32 : i32, i32
  }
  func.func @transform_2(%arg0: i32) -> (i32, i32) {
    %c0_i32 = arith.constant 0 : i32
    %c0_i32_0 = arith.constant 0 : i32
    return %arg0, %c0_i32 : i32, i32
  }
  func.func @transform_3(%arg0: i32) -> (i32, i32) {
    %c0_i32 = arith.constant 0 : i32
    %c0_i32_0 = arith.constant 0 : i32
    %c0_i32_1 = arith.constant 0 : i32
    return %c0_i32, %c0_i32_0 : i32, i32
  }
  func.func @transform_4(%arg0: i32) -> (i32, i32) {
    %c0_i32 = arith.constant 0 : i32
    %c0_i32_0 = arith.constant 0 : i32
    %c0_i32_1 = arith.constant 0 : i32
    return %c0_i32, %c0_i32_0 : i32, i32
  }
  func.func @transform_5(%arg0: i32) -> (i32, i32) {
    %c0_i32 = arith.constant 0 : i32
    %c0_i32_0 = arith.constant 0 : i32
    %c0_i32_1 = arith.constant 0 : i32
    return %c0_i32, %c0_i32_0 : i32, i32
  }
  func.func @transform_6(%arg0: i32) -> (i32, i32) {
    %c0_i32 = arith.constant 0 : i32
    %c0_i32_0 = arith.constant 0 : i32
    return %arg0, %c0_i32 : i32, i32
  }
}

module attributes {stable_mosaic.version = 11 : i64} {
  func.func @_matcher_cost_kernel(%arg0: i32, %arg1: memref<16x4xf32, #tpu.memory_space<vmem>>, %arg2: memref<16x4xf32, #tpu.memory_space<vmem>>, %arg3: memref<16x16xbf16, #tpu.memory_space<vmem>>, %arg4: memref<4x128xbf16, #tpu.memory_space<vmem>>, %arg5: memref<8x128xf32, #tpu.memory_space<vmem>>, %arg6: memref<16x128xbf16, #tpu.memory_space<vmem>>, %arg7: memref<16x128xf32, #tpu.memory_space<vmem>>) attributes {dimension_semantics = [#tpu.dimension_semantics<parallel>], iteration_bounds = array<i64: 1>, scalar_prefetch = 0 : i64, scratch_operands = 0 : i64, tpu.core_type = #tpu.core_type<tc>, window_params = [{transform_indices = @transform_0, window_bounds = array<i64: 16, 4>}, {transform_indices = @transform_1, window_bounds = array<i64: 16, 4>}, {transform_indices = @transform_2, window_bounds = array<i64: 16, 16>}, {pipeline_mode = #tpu.pipeline_mode<synchronous>, transform_indices = @transform_3, window_bounds = array<i64: 4, 128>}, {pipeline_mode = #tpu.pipeline_mode<synchronous>, transform_indices = @transform_4, window_bounds = array<i64: 8, 128>}, {pipeline_mode = #tpu.pipeline_mode<synchronous>, transform_indices = @transform_5, window_bounds = array<i64: 16, 128>}, {transform_indices = @transform_6, window_bounds = array<i64: 16, 128>}]} {
    %c0 = arith.constant 0 : index
    %c0_0 = arith.constant 0 : index
    %0 = vector.load %arg1[%c0, %c0_0] : memref<16x4xf32, #tpu.memory_space<vmem>>, vector<16x4xf32>
    %cst = arith.constant dense<0xFF800000> : vector<16xf32>
    %1 = vector.multi_reduction <maximumf>, %0, %cst [1] : vector<16x4xf32> to vector<16xf32>
    %2 = vector.shape_cast %1 : vector<16xf32> to vector<16x1xf32>
    %3 = vector.broadcast %2 : vector<16x1xf32> to vector<16x4xf32>
    %4 = arith.subf %0, %3 : vector<16x4xf32>
    %5 = math.exp %4 : vector<16x4xf32>
    %cst_1 = arith.constant dense<0.000000e+00> : vector<16xf32>
    %6 = vector.multi_reduction <add>, %5, %cst_1 [1] : vector<16x4xf32> to vector<16xf32>
    %7 = vector.shape_cast %6 : vector<16xf32> to vector<16x1xf32>
    %8 = tpu.reciprocal %7 : vector<16x1xf32> -> vector<16x1xf32>
    %9 = vector.broadcast %8 : vector<16x1xf32> to vector<16x4xf32>
    %10 = arith.mulf %5, %9 : vector<16x4xf32>
    %cst_2 = arith.constant 1.000000e+00 : f32
    %11 = vector.broadcast %cst_2 : f32 to vector<16x4xf32>
    %12 = arith.subf %11, %10 : vector<16x4xf32>
    %13 = arith.mulf %10, %10 : vector<16x4xf32>
    %cst_3 = arith.constant 7.500000e-01 : f32
    %14 = vector.broadcast %cst_3 : f32 to vector<16x4xf32>
    %15 = arith.mulf %14, %13 : vector<16x4xf32>
    %cst_4 = arith.constant 9.99999993E-9 : f32
    %16 = vector.broadcast %cst_4 : f32 to vector<16x4xf32>
    %17 = arith.addf %12, %16 : vector<16x4xf32>
    %18 = math.log %17 : vector<16x4xf32>
    %cst_5 = arith.constant 0.000000e+00 : f32
    %19 = vector.broadcast %cst_5 : f32 to vector<16x4xf32>
    %20 = arith.subf %19, %18 : vector<16x4xf32>
    %21 = arith.mulf %15, %20 : vector<16x4xf32>
    %22 = arith.mulf %12, %12 : vector<16x4xf32>
    %cst_6 = arith.constant 2.500000e-01 : f32
    %23 = vector.broadcast %cst_6 : f32 to vector<16x4xf32>
    %24 = arith.mulf %23, %22 : vector<16x4xf32>
    %cst_7 = arith.constant 9.99999993E-9 : f32
    %25 = vector.broadcast %cst_7 : f32 to vector<16x4xf32>
    %26 = arith.addf %10, %25 : vector<16x4xf32>
    %27 = math.log %26 : vector<16x4xf32>
    %cst_8 = arith.constant 0.000000e+00 : f32
    %28 = vector.broadcast %cst_8 : f32 to vector<16x4xf32>
    %29 = arith.subf %28, %27 : vector<16x4xf32>
    %30 = arith.mulf %24, %29 : vector<16x4xf32>
    %31 = arith.subf %30, %21 : vector<16x4xf32>
    %32 = arith.truncf %31 : vector<16x4xf32> to vector<16x4xbf16>
    %c0_9 = arith.constant 0 : index
    %c0_10 = arith.constant 0 : index
    %33 = vector.load %arg4[%c0_9, %c0_10] : memref<4x128xbf16, #tpu.memory_space<vmem>>, vector<4x128xbf16>
    %cst_11 = arith.constant dense<0.000000e+00> : vector<16x128xf32>
    %34 = tpu.matmul %32, %33, %cst_11 {dimension_numbers = #tpu.dot_dimension_numbers<[1], [0], [0], [1], [0, 0, 1, 1], [], []>} : vector<16x4xbf16>, vector<4x128xbf16>, vector<16x128xf32> -> vector<16x128xf32>
    %c0_12 = arith.constant 0 : index
    %c0_13 = arith.constant 0 : index
    %35 = vector.load %arg2[%c0_12, %c0_13] : memref<16x4xf32, #tpu.memory_space<vmem>>, vector<16x4xf32>
    %36 = vector.extract_strided_slice %35 {offsets = [0, 0], sizes = [16, 1], strides = [1, 1]} : vector<16x4xf32> to vector<16x1xf32>
    %37 = vector.extract_strided_slice %35 {offsets = [0, 1], sizes = [16, 1], strides = [1, 1]} : vector<16x4xf32> to vector<16x1xf32>
    %38 = vector.extract_strided_slice %35 {offsets = [0, 2], sizes = [16, 1], strides = [1, 1]} : vector<16x4xf32> to vector<16x1xf32>
    %39 = vector.extract_strided_slice %35 {offsets = [0, 3], sizes = [16, 1], strides = [1, 1]} : vector<16x4xf32> to vector<16x1xf32>
    %c0_14 = arith.constant 0 : index
    %c0_15 = arith.constant 0 : index
    %40 = vector.load %arg5[%c0_14, %c0_15] : memref<8x128xf32, #tpu.memory_space<vmem>>, vector<8x128xf32>
    %41 = vector.extract_strided_slice %40 {offsets = [0, 0], sizes = [1, 128], strides = [1, 1]} : vector<8x128xf32> to vector<1x128xf32>
    %42 = vector.extract_strided_slice %40 {offsets = [1, 0], sizes = [1, 128], strides = [1, 1]} : vector<8x128xf32> to vector<1x128xf32>
    %43 = vector.extract_strided_slice %40 {offsets = [2, 0], sizes = [1, 128], strides = [1, 1]} : vector<8x128xf32> to vector<1x128xf32>
    %44 = vector.extract_strided_slice %40 {offsets = [3, 0], sizes = [1, 128], strides = [1, 1]} : vector<8x128xf32> to vector<1x128xf32>
    %45 = vector.extract_strided_slice %40 {offsets = [4, 0], sizes = [1, 128], strides = [1, 1]} : vector<8x128xf32> to vector<1x128xf32>
    %46 = vector.broadcast %36 : vector<16x1xf32> to vector<16x128xf32>
    %47 = vector.broadcast %41 : vector<1x128xf32> to vector<16x128xf32>
    %48 = arith.subf %46, %47 : vector<16x128xf32>
    %49 = math.absf %48 : vector<16x128xf32>
    %50 = vector.broadcast %37 : vector<16x1xf32> to vector<16x128xf32>
    %51 = vector.broadcast %42 : vector<1x128xf32> to vector<16x128xf32>
    %52 = arith.subf %50, %51 : vector<16x128xf32>
    %53 = math.absf %52 : vector<16x128xf32>
    %54 = arith.addf %49, %53 : vector<16x128xf32>
    %55 = vector.broadcast %39 : vector<16x1xf32> to vector<16x128xf32>
    %56 = vector.broadcast %44 : vector<1x128xf32> to vector<16x128xf32>
    %57 = arith.minimumf %55, %56 : vector<16x128xf32>
    %58 = vector.broadcast %38 : vector<16x1xf32> to vector<16x128xf32>
    %59 = vector.broadcast %43 : vector<1x128xf32> to vector<16x128xf32>
    %60 = arith.maximumf %58, %59 : vector<16x128xf32>
    %61 = arith.subf %57, %60 : vector<16x128xf32>
    %cst_16 = arith.constant 0.000000e+00 : f32
    %62 = vector.broadcast %cst_16 : f32 to vector<16x128xf32>
    %63 = arith.maximumf %61, %62 : vector<16x128xf32>
    %64 = vector.broadcast %37 : vector<16x1xf32> to vector<16x128xf32>
    %65 = vector.broadcast %42 : vector<1x128xf32> to vector<16x128xf32>
    %66 = arith.addf %64, %65 : vector<16x128xf32>
    %67 = arith.subf %66, %63 : vector<16x128xf32>
    %cst_17 = arith.constant 1.000000e-07 : f32
    %68 = vector.broadcast %cst_17 : f32 to vector<16x128xf32>
    %69 = arith.maximumf %67, %68 : vector<16x128xf32>
    %70 = vector.broadcast %39 : vector<16x1xf32> to vector<16x128xf32>
    %71 = vector.broadcast %44 : vector<1x128xf32> to vector<16x128xf32>
    %72 = arith.maximumf %70, %71 : vector<16x128xf32>
    %73 = vector.broadcast %38 : vector<16x1xf32> to vector<16x128xf32>
    %74 = vector.broadcast %43 : vector<1x128xf32> to vector<16x128xf32>
    %75 = arith.minimumf %73, %74 : vector<16x128xf32>
    %76 = arith.subf %72, %75 : vector<16x128xf32>
    %cst_18 = arith.constant 1.000000e-07 : f32
    %77 = vector.broadcast %cst_18 : f32 to vector<16x128xf32>
    %78 = arith.maximumf %76, %77 : vector<16x128xf32>
    %79 = tpu.reciprocal %69 {approx = true} : vector<16x128xf32> -> vector<16x128xf32>
    %80 = arith.mulf %63, %79 : vector<16x128xf32>
    %81 = tpu.reciprocal %78 {approx = true} : vector<16x128xf32> -> vector<16x128xf32>
    %82 = arith.mulf %69, %81 : vector<16x128xf32>
    %83 = arith.addf %80, %82 : vector<16x128xf32>
    %c0_19 = arith.constant 0 : index
    %c0_20 = arith.constant 0 : index
    %84 = vector.load %arg3[%c0_19, %c0_20] : memref<16x16xbf16, #tpu.memory_space<vmem>>, vector<16x16xbf16>
    %85 = arith.extf %84 : vector<16x16xbf16> to vector<16x16xf32>
    %86 = arith.negf %85 : vector<16x16xf32>
    %87 = math.exp %86 : vector<16x16xf32>
    %cst_21 = arith.constant 1.000000e+00 : f32
    %88 = vector.broadcast %cst_21 : f32 to vector<16x16xf32>
    %89 = arith.addf %88, %87 : vector<16x16xf32>
    %90 = arith.divf %88, %89 : vector<16x16xf32>
    %91 = arith.negf %90 : vector<16x16xf32>
    %92 = math.exp %91 : vector<16x16xf32>
    %cst_22 = arith.constant 1.000000e+00 : f32
    %93 = vector.broadcast %cst_22 : f32 to vector<16x16xf32>
    %94 = arith.addf %93, %92 : vector<16x16xf32>
    %95 = arith.divf %93, %94 : vector<16x16xf32>
    %cst_23 = arith.constant 0.000000e+00 : f32
    %96 = vector.broadcast %cst_23 : f32 to vector<16x16xf32>
    %97 = arith.subf %96, %95 : vector<16x16xf32>
    %98 = math.log1p %97 : vector<16x16xf32>
    %cst_24 = arith.constant dense<0.000000e+00> : vector<16xf32>
    %99 = vector.multi_reduction <add>, %98, %cst_24 [1] : vector<16x16xf32> to vector<16xf32>
    %100 = vector.shape_cast %99 : vector<16xf32> to vector<16x1xf32>
    %cst_25 = arith.constant 0.000000e+00 : f32
    %101 = vector.broadcast %cst_25 : f32 to vector<16x1xf32>
    %102 = arith.subf %101, %100 : vector<16x1xf32>
    %c0_26 = arith.constant 0 : index
    %c0_27 = arith.constant 0 : index
    %103 = vector.load %arg6[%c0_26, %c0_27] : memref<16x128xbf16, #tpu.memory_space<vmem>>, vector<16x128xbf16>
    %104 = arith.truncf %90 : vector<16x16xf32> to vector<16x16xbf16>
    %cst_28 = arith.constant dense<0.000000e+00> : vector<16x128xf32>
    %105 = tpu.matmul %104, %103, %cst_28 {dimension_numbers = #tpu.dot_dimension_numbers<[1], [0], [0], [1], [0, 0, 1, 1], [], []>} : vector<16x16xbf16>, vector<16x128xbf16>, vector<16x128xf32> -> vector<16x128xf32>
    %106 = arith.truncf %95 : vector<16x16xf32> to vector<16x16xbf16>
    %cst_29 = arith.constant dense<0.000000e+00> : vector<16x128xf32>
    %107 = tpu.matmul %106, %103, %cst_29 {dimension_numbers = #tpu.dot_dimension_numbers<[1], [0], [0], [1], [0, 0, 1, 1], [], []>} : vector<16x16xbf16>, vector<16x128xbf16>, vector<16x128xf32> -> vector<16x128xf32>
    %108 = vector.broadcast %102 : vector<16x1xf32> to vector<16x128xf32>
    %109 = arith.subf %108, %105 : vector<16x128xf32>
    %cst_30 = arith.constant 6.250000e-02 : f32
    %110 = vector.broadcast %cst_30 : f32 to vector<16x128xf32>
    %111 = arith.mulf %109, %110 : vector<16x128xf32>
    %112 = vector.extract_strided_slice %107 {offsets = [0, 127], sizes = [16, 1], strides = [1, 1]} : vector<16x128xf32> to vector<16x1xf32>
    %113 = vector.broadcast %112 : vector<16x1xf32> to vector<16x128xf32>
    %114 = vector.broadcast %45 : vector<1x128xf32> to vector<16x128xf32>
    %115 = arith.addf %113, %114 : vector<16x128xf32>
    %cst_31 = arith.constant 1.000000e+00 : f32
    %116 = vector.broadcast %cst_31 : f32 to vector<16x128xf32>
    %117 = arith.addf %115, %116 : vector<16x128xf32>
    %cst_32 = arith.constant 2.000000e+00 : f32
    %118 = vector.broadcast %cst_32 : f32 to vector<16x128xf32>
    %119 = arith.mulf %118, %107 : vector<16x128xf32>
    %cst_33 = arith.constant 1.000000e+00 : f32
    %120 = vector.broadcast %cst_33 : f32 to vector<16x128xf32>
    %121 = arith.addf %119, %120 : vector<16x128xf32>
    %122 = tpu.reciprocal %117 {approx = true} : vector<16x128xf32> -> vector<16x128xf32>
    %123 = arith.mulf %121, %122 : vector<16x128xf32>
    %124 = arith.addf %54, %34 : vector<16x128xf32>
    %125 = arith.addf %124, %111 : vector<16x128xf32>
    %126 = arith.subf %125, %83 : vector<16x128xf32>
    %127 = arith.subf %126, %123 : vector<16x128xf32>
    %cst_34 = arith.constant 2.000000e+00 : f32
    %128 = vector.broadcast %cst_34 : f32 to vector<16x128xf32>
    %129 = arith.addf %127, %128 : vector<16x128xf32>
    %c0_35 = arith.constant 0 : index
    %c0_36 = arith.constant 0 : index
    %130 = vector.load %arg7[%c0_35, %c0_36] : memref<16x128xf32, #tpu.memory_space<vmem>>, vector<16x128xf32>
    tpu.vector_store %arg7[%c0_35, %c0_36], %129 {strides = array<i32>} : memref<16x128xf32, #tpu.memory_space<vmem>>, vector<16x128xf32>,
    return
  }
  func.func @transform_0(%arg0: i32) -> (i32, i32) {
    %c0_i32 = arith.constant 0 : i32
    %c0_i32_0 = arith.constant 0 : i32
    return %arg0, %c0_i32 : i32, i32
  }
  func.func @transform_1(%arg0: i32) -> (i32, i32) {
    %c0_i32 = arith.constant 0 : i32
    %c0_i32_0 = arith.constant 0 : i32
    return %arg0, %c0_i32 : i32, i32
  }
  func.func @transform_2(%arg0: i32) -> (i32, i32) {
    %c0_i32 = arith.constant 0 : i32
    %c0_i32_0 = arith.constant 0 : i32
    return %arg0, %c0_i32 : i32, i32
  }
  func.func @transform_3(%arg0: i32) -> (i32, i32) {
    %c0_i32 = arith.constant 0 : i32
    %c0_i32_0 = arith.constant 0 : i32
    %c0_i32_1 = arith.constant 0 : i32
    return %c0_i32, %c0_i32_0 : i32, i32
  }
  func.func @transform_4(%arg0: i32) -> (i32, i32) {
    %c0_i32 = arith.constant 0 : i32
    %c0_i32_0 = arith.constant 0 : i32
    %c0_i32_1 = arith.constant 0 : i32
    return %c0_i32, %c0_i32_0 : i32, i32
  }
  func.func @transform_5(%arg0: i32) -> (i32, i32) {
    %c0_i32 = arith.constant 0 : i32
    %c0_i32_0 = arith.constant 0 : i32
    %c0_i32_1 = arith.constant 0 : i32
    return %c0_i32, %c0_i32_0 : i32, i32
  }
  func.func @transform_6(%arg0: i32) -> (i32, i32) {
    %c0_i32 = arith.constant 0 : i32
    %c0_i32_0 = arith.constant 0 : i32
    return %arg0, %c0_i32 : i32, i32
  }
}

</mosaic_0001>

<bundles_post_ra>
// kernel: tpu_custom_call.1
= control target key start
LH: loop header
LB: loop body
LE: loop exit
PB: predicated region body
PF: predicated region fallthrough
CT: control target
= control target key end

     0   :  { %vm27_vm0 = vcmask 31744   ;;  %s642_s0 = inlined_call_operand.vmem [shape: f32[16,4], index: 0, kind: input, shape index: {}]   ;;  %s643_s1 = inlined_call_operand.vmem [shape: f32[16,4], index: 1, kind: input, shape index: {}]   ;;  %s644_s2 = inlined_call_operand.vmem [shape: bf16[16,16], index: 2, kind: input, shape index: {}]   ;;  %s645_s3 = inlined_call_operand.vmem [shape: bf16[4,128], index: 3, kind: input, shape index: {}]   ;;  %s646_s4 = inlined_call_operand.vmem [shape: f32[8,128], index: 4, kind: input, shape index: {}]   ;;  %s647_s5 = inlined_call_operand.vmem [shape: bf16[16,128], index: 5, kind: input, shape index: {}]   ;;  %s648_s6 = inlined_call_operand.hbm [shape: f32[16,128], index: 6, kind: output, shape index: {}]  }
   0x1   :  { %v577_v0 = vld [vmem:[%s642_s0] sm:$0xff] }
   0x2   :  { %v435_v1 = vld [vmem:[%s647_s5] sm:$0xff]  ;;  %v28_v2 = vsel %vm27_vm0, %v577_v0, -inf }
   0x3   :  { %v437_v3 = vld [vmem:[%s644_s2] sm:$0xff]  }
   0x4   :  { %11 = vsyncpa [#allocation3], 0  ;;  %29 = vmax.xlane.f32.xlu0 %v28_v2  ;;  %360 = vmatpush.bf16.msra.mxu2 %v435_v1  ;;  %v438_v4 = vunpack.c.l.bf16 %v437_v3  ;;  %v439_v5 = vunpack.c.h.bf16 %v437_v3  ;;  %v590_v6 = vld [vmem:[%s642_s0 + $0x8] sm:$0xff]  ;;  %v131_v61 = vld [vmem:[%s643_s1] sm:$0xff]  ;;  %v531_v62 = vmov 0   ;;  %v532_v63 = vmov 3  }
   0x5   :  { %342 = vmatpush.bf16.msra.mxu1 %v435_v1  ;;  %v31_v9 = vsel %vm27_vm0, %v590_v6, -inf  ;;  %448 = vset.pattern.permute.xlu2 %v531_v62  ;;  %v132_v1 = vld [vmem:[%s643_s1 + $0x8] sm:$0xff]  ;;  %s412_s11 = sshll.u32 %s648_s6, 4  ;;  %s537_s12 = smov 128   ;;  %s413_s11 = int_to_ptr.hbm [resolvable:$true] %s412_s11 }
   0x6   :  { %v425_v7 = vmul.f32 -1.442695, %v438_v4  ;;  %v426_v8 = vmul.f32 -1.442695, %v439_v5  ;;  %450 = vset.pattern.permute.xlu1 %v532_v63  ;;  %136 = vperm.xlu2 %448, %v131_v61   ;;  %s538_s13 = smov 8  }
   0x8   :  { %457 = vpow2.f32 %v425_v7 }
   0x9   :  { %459 = vpow2.f32 %v426_v8 }
   0xc   :  { %32 = vmax.xlane.f32.xlu0 %v31_v9 }
   0xe   :  { %v458_v10 = vpop.eup %457  ;;  %141 = vperm.xlu2 %448, %v132_v1  }
   0xf   :  { %v460_v11 = vpop.eup %459  ;;  %v224_v12 = vadd.f32 1.0, %v458_v10 }
  0x10   :  { %v225_v13 = vadd.f32 1.0, %v460_v11  ;;  %v533_v11 = vmov 1  }
  0x11   :  { %461 = vrcp.f32 %v224_v12  ;;  %vm231_vm1 = vweird.f32 %v224_v12  ;;  %v237_v17 = vand.u32 2147483648, %v224_v12  ;;  %v235_v20 = vand.u32 2147483647, %v224_v12  ;;  %449 = vset.pattern.permute.xlu0 %v533_v11 }
  0x12   :  { %463 = vrcp.f32 %v225_v13  ;;  %v252_v21 = vand.u32 2147483648, %v225_v13  ;;  %vm246_vm3 = vweird.f32 %v225_v13  ;;  %v250_v23 = vand.u32 2147483647, %v225_v13 }
  0x13   :  { %v238_v25 = vor.u32 1.1754944e-38, %v237_v17  ;;  %vm236_vm6 = vcmp.eq.f32.partialorder %v235_v20, 8.507059e+37 }
  0x14   :  { %v253_v28 = vor.u32 1.1754944e-38, %v252_v21  ;;  %vm251_vm8 = vcmp.eq.f32.partialorder %v250_v23, 8.507059e+37 }
  0x16   :  { %451 = vset.pattern.permute.xlu2 %v532_v63 }
  0x17   :  { %v462_v14 = vpop.eup %461  ;;  %169 = vperm.xlu2 %451, %v132_v1  }
  0x18   :  { %v464_v15 = vpop.eup %463  ;;  %v227_v16 = vmul.f32 %v462_v14, %v224_v12  ;;  %vm232_vm2 = vweird.f32 %v462_v14  ;;  %v534_v12 = vmov 2  }
  0x19   :  { %v242_v18 = vmul.f32 %v464_v15, %v225_v13  ;;  %vm247_vm4 = vweird.f32 %v464_v15  ;;  %vm233_vm5 = vmor %vm231_vm1, %vm232_vm2  ;;  %vm314_vm2 = vcmask 130048  }
  0x1a   :  { %v228_v19 = vsub.f32 1.0, %v227_v16  ;;  %vm248_vm7 = vmor %vm246_vm3, %vm247_vm4 }
  0x1b   :  { %v243_v22 = vsub.f32 1.0, %v242_v18 }
  0x1c   :  { %v229_v24 = vmul.f32 %v462_v14, %v228_v19 }
  0x1d   :  { %v244_v26 = vmul.f32 %v464_v15, %v243_v22 }
  0x1e   :  { %v230_v27 = vadd.f32 %v462_v14, %v229_v24 }
  0x1f   :  { %v245_v29 = vadd.f32 %v464_v15, %v244_v26  ;;  %452 = vset.pattern.permute.xlu2 %v534_v12 }
  0x20   :  { %v234_v30 = vsel %vm233_vm5, %v462_v14, %v230_v27  ;;  %150 = vperm.xlu0 %449, %v131_v61   ;;  %176 = vperm.xlu2 %452, %v131_v61   ;;  %vm113_vm5 = vcmask 1041408  }
  0x21   :  { %v594_v31 = vsel %vm236_vm6, %v238_v25, %v234_v30  ;;  %v249_v32 = vsel %vm248_vm7, %v464_v15, %v245_v29  ;;  %v109_v30 = vld [vmem:[%s645_s3] sm:$0x3] }
  0x22   :  { %v596_v33 = vsel %vm251_vm8, %v253_v28, %v249_v32  ;;  %v427_v34 = vmul.f32 -1.442695, %v594_v31 }
  0x23   :  { %v428_v35 = vmul.f32 -1.442695, %v596_v33  ;;  %v325_v16 = vpack.c.bf16 %v596_v33, %v594_v31  ;;  %v115_v33 = vsel %vm113_vm5, %v109_v30, 0 }
  0x24   :  { %465 = vpow2.f32 %v427_v34  ;;  %124 = vmatpush.bf16.msra.mxu0 %v115_v33 }
  0x25   :  { %467 = vpow2.f32 %v428_v35  ;;  %433 = vmatmul.msk.bf16.vlgmr.msra.gmra.mxu1 %vm314_vm2, %v325_v16 }
  0x28   :  { %180 = vperm.xlu2 %452, %v132_v1  }
  0x2a   :  { %v466_v36 = vpop.eup %465 }
  0x2b   :  { %v468_v37 = vpop.eup %467  ;;  %v262_v38 = vadd.f32 1.0, %v466_v36 }
  0x2c   :  { %v263_v39 = vadd.f32 1.0, %v468_v37 }
  0x2d   :  { %469 = vrcp.f32 %v262_v38  ;;  %vm269_vm9 = vweird.f32 %v262_v38  ;;  %v275_v43 = vand.u32 2147483648, %v262_v38  ;;  %v273_v46 = vand.u32 2147483647, %v262_v38 }
  0x2e   :  { %471 = vrcp.f32 %v263_v39  ;;  %v290_v47 = vand.u32 2147483648, %v263_v39  ;;  %vm284_vm11 = vweird.f32 %v263_v39  ;;  %v288_v49 = vand.u32 2147483647, %v263_v39 }
  0x2f   :  { %v276_v51 = vor.u32 1.1754944e-38, %v275_v43  ;;  %vm274_vm14 = vcmp.eq.f32.partialorder %v273_v46, 8.507059e+37 }
  0x30   :  { %v291_v54 = vor.u32 1.1754944e-38, %v290_v47  ;;  %vm289_vm1 = vcmp.eq.f32.partialorder %v288_v49, 8.507059e+37  ;;  %453 = vset.pattern.permute.xlu2 %v533_v11 }
  0x31   :  { %154 = vperm.xlu2 %453, %v132_v1  }
  0x33   :  { %v470_v40 = vpop.eup %469 }
  0x34   :  { %v472_v41 = vpop.eup %471  ;;  %v265_v42 = vmul.f32 %v470_v40, %v262_v38  ;;  %vm270_vm10 = vweird.f32 %v470_v40 }
  0x35   :  { %v280_v44 = vmul.f32 %v472_v41, %v263_v39  ;;  %vm285_vm12 = vweird.f32 %v472_v41  ;;  %vm271_vm13 = vmor %vm269_vm9, %vm270_vm10 }
  0x36   :  { %v266_v45 = vsub.f32 1.0, %v265_v42  ;;  %vm286_vm15 = vmor %vm284_vm11, %vm285_vm12 }
  0x37   :  { %v281_v48 = vsub.f32 1.0, %v280_v44 }
  0x38   :  { %v267_v50 = vmul.f32 %v470_v40, %v266_v45 }
  0x39   :  { %v282_v52 = vmul.f32 %v472_v41, %v281_v48 }
  0x3a   :  { %v268_v53 = vadd.f32 %v470_v40, %v267_v50 }
  0x3b   :  { %v283_v55 = vadd.f32 %v472_v41, %v282_v52 }
  0x3c   :  { %v272_v56 = vsel %vm271_vm13, %v470_v40, %v268_v53 }
  0x3d   :  { %v277_v57 = vsel %vm274_vm14, %v276_v51, %v272_v56  ;;  %v287_v58 = vsel %vm286_vm15, %v472_v41, %v283_v55 }
  0x3e   :  { %v292_v59 = vsel %vm289_vm1, %v291_v54, %v287_v58  ;;  %v294_v22 = vsub.f32 0.0, %v277_v57 }
  0x3f   :  { %v349_v60 = vpack.c.bf16 %v292_v59, %v277_v57  ;;  %v295_v19 = vsub.f32 0.0, %v292_v59 }
  0x40   :  { %v296_v28 = vadd.f32 1.0, %v294_v22  ;;  %v299_v39 = vmul.f32 -0.5, %v294_v22  ;;  %v302_v58 = vand.u32 2147483647, %v294_v22 }
  0x41   :  { %434 = vmatmul.msk.bf16.vlgmr.msra.gmra.mxu2 %vm314_vm2, %v349_v60  ;;  %v305_v27 = vadd.f32 1.0, %v295_v19  ;;  %v308_v38 = vmul.f32 -0.5, %v295_v19  ;;  %v311_v52 = vand.u32 2147483647, %v295_v19 }
  0x42   :  { %v300_v43 = vadd.f32 1.0, %v299_v39  ;;  %vm303_vm13 = vcmp.lt.f32.partialorder %v302_v58, 0.0004427343 }
  0x43   :  { %v309_v42 = vadd.f32 1.0, %v308_v38  ;;  %vm312_vm11 = vcmp.lt.f32.partialorder %v311_v52, 0.0004427343  ;;  %v133_v38 = vld [vmem:[%s646_s4] sm:$0xff]  ;;  %s536_s4 = smov [#allocation2]  }
  0x44   :  { %v301_v56 = vmul.f32 %v300_v43, %v294_v22  ;;  %v172_v39 = vperm.slane %v133_v38, 3  ;;  %s410_s8 = sshll.u32 %s536_s4, 4  ;;  %s411_s8 = int_to_ptr.vmem [resolvable:$true] %s410_s8 }
  0x45   :  { %v310_v51 = vmul.f32 %v309_v42, %v295_v19 }
  0x77   :  { %v30_v2 = vpop.xlane.xlu0 %29 }
  0x78   :  { %v34_v3 = vsub.f32 %v577_v0, %v30_v2 }
  0x7a   :  { %v36_v4 = vmul.f32 1.442695, %v34_v3 }
  0x7c   :  { %473 = vpow2.f32 %v36_v4 }
  0x7f   :  { %v33_v5 = vpop.xlane.xlu0 %32 }
  0x80   :  { %v35_v7 = vsub.f32 %v590_v6, %v33_v5  ;;  %v535_v6 = vmov 127  }
  0x81   :  { %455 = vset.pattern.permute.xlu2 %v535_v6  ;;  %456 = vset.pattern.permute.xlu0 %v535_v6 }
  0x82   :  { %v474_v8 = vpop.eup %473  ;;  %v38_v9 = vmul.f32 1.442695, %v35_v7 }
  0x83   :  { %v40_v10 = vsel %vm27_vm0, %v474_v8, 0.0 }
  0x84   :  { %475 = vpow2.f32 %v38_v9  ;;  %41 = vadd.xlane.f32.xlu1 %v40_v10 }
  0x8a   :  { %v610_v0 = vpop.eup %475 }
  0x8b   :  { %v43_v13 = vsel %vm27_vm0, %v610_v0, 0.0 }
  0x8c   :  { %44 = vadd.xlane.f32.xlu1 %v43_v13 }
  0xa5   :  { %165 = vperm.xlu1 %450, %v131_v61  }
  0xad   :  { %454 = vset.pattern.permute.xlu1 %v535_v6 }
  0xc4   :  { %v614_v14 = vpop.f32.mrf.mxu2 }
  0xc5   :  { %373 = vperm.xlu1 %454, %v614_v14  }
  0xcc   :  { %v617_v15 = vpop.f32.mrf.mxu2 }
  0xcd   :  { %378 = vperm.xlu2 %455, %v617_v15  }
  0xf7   :  { %v42_v17 = vpop.xlane.xlu1 %41 }
  0xf8   :  { %477 = vrcp.f32 %v42_v17  ;;  %v57_v24 = vand.u32 2147483648, %v42_v17  ;;  %v55_v26 = vand.u32 2147483647, %v42_v17  ;;  %vm51_vm4 = vweird.f32 %v42_v17 }
  0xfa   :  { %v58_v32 = vor.u32 1.1754944e-38, %v57_v24  ;;  %vm56_vm7 = vcmp.eq.f32.partialorder %v55_v26, 8.507059e+37 }
  0xfe   :  { %v478_v18 = vpop.eup %477 }
  0xff   :  { %v47_v20 = vmul.f32 %v478_v18, %v42_v17  ;;  %v45_v21 = vpop.xlane.xlu1 %44  ;;  %vm52_vm3 = vweird.f32 %v478_v18 }
 0x100   :  { %479 = vrcp.f32 %v45_v21  ;;  %vm53_vm6 = vmor %vm51_vm4, %vm52_vm3  ;;  %v71_v37 = vand.u32 2147483648, %v45_v21  ;;  %vm65_vm8 = vweird.f32 %v45_v21  ;;  %v69_v46 = vand.u32 2147483647, %v45_v21 }
 0x101   :  { %v48_v23 = vsub.f32 1.0, %v47_v20  ;;  %481 = vlog2.f32 %v305_v27 }
 0x102   :  { %483 = vlog2.f32 %v296_v28  ;;  %v72_v49 = vor.u32 1.1754944e-38, %v71_v37  ;;  %vm70_vm12 = vcmp.eq.f32.partialorder %v69_v46, 8.507059e+37 }
 0x103   :  { %v49_v25 = vmul.f32 %v478_v18, %v48_v23 }
 0x105   :  { %v50_v29 = vadd.f32 %v478_v18, %v49_v25 }
 0x106   :  { %v480_v31 = vpop.eup %479 }
 0x107   :  { %v54_v34 = vsel %vm53_vm6, %v478_v18, %v50_v29  ;;  %v61_v35 = vmul.f32 %v480_v31, %v45_v21  ;;  %v482_v44 = vpop.eup %481  ;;  %vm66_vm9 = vweird.f32 %v480_v31 }
 0x108   :  { %v59_v36 = vsel %vm56_vm7, %v58_v32, %v54_v34  ;;  %v484_v48 = vpop.eup %483  ;;  %v307_v50 = vmul.f32 0.6931472, %v482_v44  ;;  %vm67_vm10 = vmor %vm65_vm8, %vm66_vm9  ;;  %v137_v34 = vpop.permute.xlu2 %136 }
 0x109   :  { %v74_v40 = vmul.f32 %v474_v8, %v59_v36  ;;  %v62_v41 = vsub.f32 1.0, %v61_v35  ;;  %v298_v57 = vmul.f32 0.6931472, %v484_v48 }
 0x10a   :  { %v313_v60 = vsel %vm312_vm11, %v310_v51, %v307_v50 }
 0x10b   :  { %v63_v45 = vmul.f32 %v480_v31, %v62_v41  ;;  %v76_v47 = vsub.f32 1.0, %v74_v40  ;;  %v96_v55 = vadd.f32 1e-08, %v74_v40  ;;  %v318_v62 = vsel %vm314_vm2, %v313_v60, 0.0 }
 0x10c   :  { %319 = vadd.xlane.f32.xlu0 %v318_v62  ;;  %v304_v1 = vsel %vm303_vm13, %v301_v56, %v298_v57  ;;  %v78_v10 = vmul.f32 %v74_v40, %v74_v40  ;;  %v183_v40 = vperm.slane %v133_v38, 2 }
 0x10d   :  { %v64_v53 = vadd.f32 %v480_v31, %v63_v45  ;;  %v82_v54 = vadd.f32 1e-08, %v76_v47  ;;  %v315_v2 = vsel %vm314_vm2, %v304_v1, 0.0  ;;  %v92_v12 = vmul.f32 %v76_v47, %v76_v47  ;;  %v151_v47 = vpop.permute.xlu0 %150 }
 0x10e   :  { %316 = vadd.xlane.f32.xlu1 %v315_v2  ;;  %v80_v19 = vmul.f32 0.75, %v78_v10  ;;  %v157_v45 = vperm.slane %v133_v38, 1  ;;  %v381_v1 = vperm.slane %v133_v38, 4 }
 0x10f   :  { %v68_v59 = vsel %vm67_vm10, %v480_v31, %v64_v53  ;;  %485 = vlog2.f32 %v82_v54  ;;  %v94_v22 = vmul.f32 0.25, %v92_v12 }
 0x110   :  { %v73_v61 = vsel %vm70_vm12, %v72_v49, %v68_v59  ;;  %487 = vlog2.f32 %v96_v55  ;;  %v142_v35 = vpop.permute.xlu2 %141  ;;  %v190_v53 = vadd.f32 %v157_v45, %v151_v47  ;;  %v158_v10 = vsub.f32 %v151_v47, %v157_v45 }
 0x111   :  { %v75_v63 = vmul.f32 %v610_v0, %v73_v61 }
 0x113   :  { %v77_v3 = vsub.f32 1.0, %v75_v63  ;;  %v97_v4 = vadd.f32 1e-08, %v75_v63  ;;  %v79_v6 = vmul.f32 %v75_v63, %v75_v63 }
 0x115   :  { %v486_v5 = vpop.eup %485  ;;  %v83_v7 = vadd.f32 1e-08, %v77_v3  ;;  %489 = vlog2.f32 %v97_v4  ;;  %v93_v16 = vmul.f32 %v77_v3, %v77_v3  ;;  %v81_v24 = vmul.f32 0.75, %v79_v6 }
 0x116   :  { %v488_v8 = vpop.eup %487  ;;  %v85_v9 = vmul.f32 0.6931472, %v486_v5  ;;  %v144_v3 = vperm.slane %v133_v38, 0 }
 0x117   :  { %491 = vlog2.f32 %v83_v7  ;;  %v99_v11 = vmul.f32 0.6931472, %v488_v8  ;;  %v95_v27 = vmul.f32 0.25, %v93_v16  ;;  %v166_v41 = vpop.permute.xlu1 %165 }
 0x118   :  { %v88_v0 = vsub.f32 0.0, %v85_v9  ;;  %v170_v36 = vpop.permute.xlu2 %169  ;;  %v173_v43 = vmin.f32 %v166_v41, %v172_v39  ;;  %v196_v49 = vmax.f32 %v166_v41, %v172_v39  ;;  %v145_v9 = vsub.f32 %v137_v34, %v144_v3 }
 0x119   :  { %v102_v21 = vsub.f32 0.0, %v99_v11  ;;  %v174_v50 = vmin.f32 %v170_v36, %v172_v39  ;;  %v197_v59 = vmax.f32 %v170_v36, %v172_v39 }
 0x11a   :  { %v90_v26 = vmul.f32 %v88_v0, %v80_v19  ;;  %v160_v19 = vand.u32 2147483647, %v158_v10 }
 0x11b   :  { %v490_v13 = vpop.eup %489  ;;  %v104_v29 = vmul.f32 %v102_v21, %v94_v22 }
 0x11c   :  { %v101_v18 = vmul.f32 0.6931472, %v490_v13  ;;  %v344_v13 = vpop.f32.mrf.mxu1 }
 0x11d   :  { %v492_v17 = vpop.eup %491  ;;  %v106_v31 = vsub.f32 %v104_v29, %v90_v26 }
 0x11e   :  { %v87_v20 = vmul.f32 0.6931472, %v492_v17  ;;  %v103_v23 = vsub.f32 0.0, %v101_v18  ;;  %v147_v18 = vand.u32 2147483647, %v145_v9 }
 0x120   :  { %v89_v25 = vsub.f32 0.0, %v87_v20  ;;  %v105_v30 = vmul.f32 %v103_v23, %v95_v27  ;;  %v177_v37 = vpop.permute.xlu2 %176  ;;  %v386_v23 = vmul.f32 2.0, %v614_v14  ;;  %v162_v29 = vadd.f32 %v160_v19, %v147_v18 }
 0x121   :  { %v184_v42 = vmax.f32 %v177_v37, %v183_v40  ;;  %v198_v48 = vmin.f32 %v177_v37, %v183_v40 }
 0x122   :  { %v91_v28 = vmul.f32 %v89_v25, %v81_v24  ;;  %v146_v24 = vsub.f32 %v142_v35, %v144_v3  ;;  %v388_v37 = vadd.f32 1.0, %v386_v23 }
 0x123   :  { %v186_v46 = vsub.f32 %v173_v43, %v184_v42  ;;  %v200_v55 = vsub.f32 %v196_v49, %v198_v48 }
 0x124   :  { %v107_v32 = vsub.f32 %v105_v30, %v91_v28  ;;  %v346_v38 = vpop.f32.mrf.mxu1 }
 0x125   :  { %v188_v52 = vmax.f32 %v186_v46, 0.0  ;;  %v202_v61 = vmax.f32 %v200_v55, 1e-07  ;;  %v387_v46 = vmul.f32 2.0, %v617_v15 }
 0x126   :  { %v108_v33 = vpack.c.bf16 %v107_v32, %v106_v31 }
 0x127   :  { %v192_v57 = vsub.f32 %v190_v53, %v188_v52  ;;  %493 = vrcp.f32 %v202_v61 }
 0x128   :  { %424 = vmatmul.msk.bf16.vlgmr.msra.gmra.mxu0 %vm27_vm0, %v108_v33  ;;  %v181_v44 = vpop.permute.xlu2 %180 }
 0x129   :  { %v185_v51 = vmax.f32 %v181_v44, %v183_v40  ;;  %v199_v60 = vmin.f32 %v181_v44, %v183_v40  ;;  %v194_v2 = vmax.f32 %v192_v57, 1e-07  ;;  %v148_v40 = vand.u32 2147483647, %v146_v24 }
 0x12b   :  { %v634_v56 = vsub.f32 %v174_v50, %v185_v51  ;;  %v201_v7 = vsub.f32 %v197_v59, %v199_v60  ;;  %495 = vrcp.f32 %v194_v2 }
 0x12d   :  { %v189_v62 = vmax.f32 %v634_v56, 0.0  ;;  %v203_v6 = vmax.f32 %v201_v7, 1e-07  ;;  %v494_v17 = vpop.eup %493  ;;  %v389_v56 = vadd.f32 1.0, %v387_v46 }
 0x12e   :  { %v210_v27 = vmul.f32 %v494_v17, %v194_v2 }
 0x130   :  { %v155_v58 = vpop.permute.xlu2 %154 }
 0x131   :  { %v191_v63 = vadd.f32 %v157_v45, %v155_v58  ;;  %v496_v21 = vpop.eup %495  ;;  %v159_v25 = vsub.f32 %v155_v58, %v157_v45 }
 0x132   :  { %v206_v30 = vmul.f32 %v496_v21, %v188_v52 }
 0x133   :  { %v193_v8 = vsub.f32 %v191_v63, %v189_v62  ;;  %v161_v41 = vand.u32 2147483647, %v159_v25 }
 0x134   :  { %v212_v42 = vadd.f32 %v210_v27, %v206_v30 }
 0x135   :  { %v195_v16 = vmax.f32 %v193_v8, 1e-07  ;;  %v163_v49 = vadd.f32 %v161_v41, %v148_v40 }
 0x137   :  { %v374_v54 = vpop.permute.xlu1 %373 }
 0x138   :  { %v382_v4 = vadd.f32 %v381_v1, %v374_v54  ;;  %v379_v0 = vpop.permute.xlu2 %378 }
 0x139   :  { %v383_v22 = vadd.f32 %v381_v1, %v379_v0 }
 0x13a   :  { %v384_v12 = vadd.f32 1.0, %v382_v4 }
 0x13b   :  { %v385_v31 = vadd.f32 1.0, %v383_v22 }
 0x13c   :  { %497 = vrcp.f32 %v384_v12 }
 0x13d   :  { %499 = vrcp.f32 %v203_v6 }
 0x13e   :  { %501 = vrcp.f32 %v195_v16 }
 0x13f   :  { %503 = vrcp.f32 %v385_v31 }
 0x142   :  { %v498_v36 = vpop.eup %497 }
 0x143   :  { %v500_v39 = vpop.eup %499  ;;  %v392_v44 = vmul.f32 %v498_v36, %v388_v37 }
 0x144   :  { %v502_v35 = vpop.eup %501  ;;  %v211_v47 = vmul.f32 %v500_v39, %v195_v16 }
 0x145   :  { %v207_v50 = vmul.f32 %v502_v35, %v189_v62  ;;  %v504_v55 = vpop.eup %503 }
 0x146   :  { %v393_v59 = vmul.f32 %v504_v55, %v389_v56 }
 0x147   :  { %v213_v57 = vadd.f32 %v211_v47, %v207_v50 }
 0x17f   :  { %v320_v26 = vpop.xlane.xlu0 %319 }
 0x180   :  { %v322_v33 = vsub.f32 0.0, %v320_v26 }
 0x181   :  { %v317_v5 = vpop.xlane.xlu1 %316 }
 0x182   :  { %v321_v11 = vsub.f32 0.0, %v317_v5  ;;  %v368_v43 = vsub.f32 %v322_v33, %v346_v38 }
 0x184   :  { %v367_v20 = vsub.f32 %v321_v11, %v344_v13  ;;  %v370_v52 = vmul.f32 0.0625, %v368_v43 }
 0x186   :  { %v369_v28 = vmul.f32 0.0625, %v367_v20 }
 0x1a5   :  { %v126_v32 = vpop.f32.mrf.mxu0 }
 0x1a6   :  { %v394_v34 = vadd.f32 %v162_v29, %v126_v32 }
 0x1a8   :  { %v396_v14 = vadd.f32 %v394_v34, %v369_v28 }
 0x1aa   :  { %v398_v45 = vsub.f32 %v396_v14, %v212_v42 }
 0x1ac   :  { %v400_v48 = vsub.f32 %v398_v45, %v392_v44 }
 0x1ad   :  { %v128_v51 = vpop.f32.mrf.mxu0 }
 0x1ae   :  { %v402_v53 = vadd.f32 2.0, %v400_v48  ;;  %v395_v54 = vadd.f32 %v163_v49, %v128_v51 }
 0x1b0   :  { %404 = vst [vmem:[#allocation2] sm:$0xff] %v402_v53  ;;  %v397_v58 = vadd.f32 %v395_v54, %v370_v52 }
 0x1b2   :  { %v399_v60 = vsub.f32 %v397_v58, %v213_v57 }
 0x1b4   :  { %v401_v15 = vsub.f32 %v399_v60, %v393_v59 }
 0x1b6   :  { %v403_v61 = vadd.f32 2.0, %v401_v15 }
 0x1b8   :  { %405 = vst [vmem:[#allocation2 + $0x8] sm:$0xff] %v403_v61 }
 0x1b9   :  { %418 = dma.vmem_to_hbm [thread:$0]  %s411_s8, 256, %s413_s11, [#allocation3], %s537_s12, %s537_s12, %s538_s13  }
 0x1ba   :  { %529 = dma.done.wait [#allocation3], 256  }
 0x1bb   :  { %530 = vsyncadd [#allocation3], 4294967040 }
 0x1bc   :  { %423 = vsyncpa [#allocation3], 1 }

// kernel: tpu_custom_call.1
= control target key start
LH: loop header
LB: loop body
LE: loop exit
PB: predicated region body
PF: predicated region fallthrough
CT: control target
= control target key end

     0   :  { %vm27_vm0 = vcmask 31744   ;;  %s642_s0 = inlined_call_operand.vmem [shape: f32[16,4], index: 0, kind: input, shape index: {}]   ;;  %s643_s1 = inlined_call_operand.vmem [shape: f32[16,4], index: 1, kind: input, shape index: {}]   ;;  %s644_s2 = inlined_call_operand.vmem [shape: bf16[16,16], index: 2, kind: input, shape index: {}]   ;;  %s645_s3 = inlined_call_operand.vmem [shape: bf16[4,128], index: 3, kind: input, shape index: {}]   ;;  %s646_s4 = inlined_call_operand.vmem [shape: f32[8,128], index: 4, kind: input, shape index: {}]   ;;  %s647_s5 = inlined_call_operand.vmem [shape: bf16[16,128], index: 5, kind: input, shape index: {}]   ;;  %s648_s6 = inlined_call_operand.hbm [shape: f32[16,128], index: 6, kind: output, shape index: {}]  }
   0x1   :  { %v577_v0 = vld [vmem:[%s642_s0] sm:$0xff] }
   0x2   :  { %v435_v1 = vld [vmem:[%s647_s5] sm:$0xff]  ;;  %v28_v2 = vsel %vm27_vm0, %v577_v0, -inf }
   0x3   :  { %v437_v3 = vld [vmem:[%s644_s2] sm:$0xff]  }
   0x4   :  { %11 = vsyncpa [#allocation3], 0  ;;  %29 = vmax.xlane.f32.xlu0 %v28_v2  ;;  %360 = vmatpush.bf16.msra.mxu2 %v435_v1  ;;  %v438_v4 = vunpack.c.l.bf16 %v437_v3  ;;  %v439_v5 = vunpack.c.h.bf16 %v437_v3  ;;  %v590_v6 = vld [vmem:[%s642_s0 + $0x8] sm:$0xff]  ;;  %v131_v61 = vld [vmem:[%s643_s1] sm:$0xff]  ;;  %v531_v62 = vmov 0   ;;  %v532_v63 = vmov 3  }
   0x5   :  { %342 = vmatpush.bf16.msra.mxu1 %v435_v1  ;;  %v31_v9 = vsel %vm27_vm0, %v590_v6, -inf  ;;  %448 = vset.pattern.permute.xlu2 %v531_v62  ;;  %v132_v1 = vld [vmem:[%s643_s1 + $0x8] sm:$0xff]  ;;  %s412_s11 = sshll.u32 %s648_s6, 4  ;;  %s537_s12 = smov 128   ;;  %s413_s11 = int_to_ptr.hbm [resolvable:$true] %s412_s11 }
   0x6   :  { %v425_v7 = vmul.f32 -1.442695, %v438_v4  ;;  %v426_v8 = vmul.f32 -1.442695, %v439_v5  ;;  %450 = vset.pattern.permute.xlu1 %v532_v63  ;;  %136 = vperm.xlu2 %448, %v131_v61   ;;  %s538_s13 = smov 8  }
   0x8   :  { %457 = vpow2.f32 %v425_v7 }
   0x9   :  { %459 = vpow2.f32 %v426_v8 }
   0xc   :  { %32 = vmax.xlane.f32.xlu0 %v31_v9 }
   0xe   :  { %v458_v10 = vpop.eup %457  ;;  %141 = vperm.xlu2 %448, %v132_v1  }
   0xf   :  { %v460_v11 = vpop.eup %459  ;;  %v224_v12 = vadd.f32 1.0, %v458_v10 }
  0x10   :  { %v225_v13 = vadd.f32 1.0, %v460_v11  ;;  %v533_v11 = vmov 1  }
  0x11   :  { %461 = vrcp.f32 %v224_v12  ;;  %vm231_vm1 = vweird.f32 %v224_v12  ;;  %v237_v17 = vand.u32 2147483648, %v224_v12  ;;  %v235_v20 = vand.u32 2147483647, %v224_v12  ;;  %449 = vset.pattern.permute.xlu0 %v533_v11 }
  0x12   :  { %463 = vrcp.f32 %v225_v13  ;;  %v252_v21 = vand.u32 2147483648, %v225_v13  ;;  %vm246_vm3 = vweird.f32 %v225_v13  ;;  %v250_v23 = vand.u32 2147483647, %v225_v13 }
  0x13   :  { %v238_v25 = vor.u32 1.1754944e-38, %v237_v17  ;;  %vm236_vm6 = vcmp.eq.f32.partialorder %v235_v20, 8.507059e+37 }
  0x14   :  { %v253_v28 = vor.u32 1.1754944e-38, %v252_v21  ;;  %vm251_vm8 = vcmp.eq.f32.partialorder %v250_v23, 8.507059e+37 }
  0x16   :  { %451 = vset.pattern.permute.xlu2 %v532_v63 }
  0x17   :  { %v462_v14 = vpop.eup %461  ;;  %169 = vperm.xlu2 %451, %v132_v1  }
  0x18   :  { %v464_v15 = vpop.eup %463  ;;  %v227_v16 = vmul.f32 %v462_v14, %v224_v12  ;;  %vm232_vm2 = vweird.f32 %v462_v14  ;;  %v534_v12 = vmov 2  }
  0x19   :  { %v242_v18 = vmul.f32 %v464_v15, %v225_v13  ;;  %vm247_vm4 = vweird.f32 %v464_v15  ;;  %vm233_vm5 = vmor %vm231_vm1, %vm232_vm2  ;;  %vm314_vm2 = vcmask 130048  }
  0x1a   :  { %v228_v19 = vsub.f32 1.0, %v227_v16  ;;  %vm248_vm7 = vmor %vm246_vm3, %vm247_vm4 }
  0x1b   :  { %v243_v22 = vsub.f32 1.0, %v242_v18 }
  0x1c   :  { %v229_v24 = vmul.f32 %v462_v14, %v228_v19 }
  0x1d   :  { %v244_v26 = vmul.f32 %v464_v15, %v243_v22 }
  0x1e   :  { %v230_v27 = vadd.f32 %v462_v14, %v229_v24 }
  0x1f   :  { %v245_v29 = vadd.f32 %v464_v15, %v244_v26  ;;  %452 = vset.pattern.permute.xlu2 %v534_v12 }
  0x20   :  { %v234_v30 = vsel %vm233_vm5, %v462_v14, %v230_v27  ;;  %150 = vperm.xlu0 %449, %v131_v61   ;;  %176 = vperm.xlu2 %452, %v131_v61   ;;  %vm113_vm5 = vcmask 1041408  }
  0x21   :  { %v594_v31 = vsel %vm236_vm6, %v238_v25, %v234_v30  ;;  %v249_v32 = vsel %vm248_vm7, %v464_v15, %v245_v29  ;;  %v109_v30 = vld [vmem:[%s645_s3] sm:$0x3] }
  0x22   :  { %v596_v33 = vsel %vm251_vm8, %v253_v28, %v249_v32  ;;  %v427_v34 = vmul.f32 -1.442695, %v594_v31 }
  0x23   :  { %v428_v35 = vmul.f32 -1.442695, %v596_v33  ;;  %v325_v16 = vpack.c.bf16 %v596_v33, %v594_v31  ;;  %v115_v33 = vsel %vm113_vm5, %v109_v30, 0 }
  0x24   :  { %465 = vpow2.f32 %v427_v34  ;;  %124 = vmatpush.bf16.msra.mxu0 %v115_v33 }
  0x25   :  { %467 = vpow2.f32 %v428_v35  ;;  %433 = vmatmul.msk.bf16.vlgmr.msra.gmra.mxu1 %vm314_vm2, %v325_v16 }
  0x28   :  { %180 = vperm.xlu2 %452, %v132_v1  }
  0x2a   :  { %v466_v36 = vpop.eup %465 }
  0x2b   :  { %v468_v37 = vpop.eup %467  ;;  %v262_v38 = vadd.f32 1.0, %v466_v36 }
  0x2c   :  { %v263_v39 = vadd.f32 1.0, %v468_v37 }
  0x2d   :  { %469 = vrcp.f32 %v262_v38  ;;  %vm269_vm9 = vweird.f32 %v262_v38  ;;  %v275_v43 = vand.u32 2147483648, %v262_v38  ;;  %v273_v46 = vand.u32 2147483647, %v262_v38 }
  0x2e   :  { %471 = vrcp.f32 %v263_v39  ;;  %v290_v47 = vand.u32 2147483648, %v263_v39  ;;  %vm284_vm11 = vweird.f32 %v263_v39  ;;  %v288_v49 = vand.u32 2147483647, %v263_v39 }
  0x2f   :  { %v276_v51 = vor.u32 1.1754944e-38, %v275_v43  ;;  %vm274_vm14 = vcmp.eq.f32.partialorder %v273_v46, 8.507059e+37 }
  0x30   :  { %v291_v54 = vor.u32 1.1754944e-38, %v290_v47  ;;  %vm289_vm1 = vcmp.eq.f32.partialorder %v288_v49, 8.507059e+37  ;;  %453 = vset.pattern.permute.xlu2 %v533_v11 }
  0x31   :  { %154 = vperm.xlu2 %453, %v132_v1  }
  0x33   :  { %v470_v40 = vpop.eup %469 }
  0x34   :  { %v472_v41 = vpop.eup %471  ;;  %v265_v42 = vmul.f32 %v470_v40, %v262_v38  ;;  %vm270_vm10 = vweird.f32 %v470_v40 }
  0x35   :  { %v280_v44 = vmul.f32 %v472_v41, %v263_v39  ;;  %vm285_vm12 = vweird.f32 %v472_v41  ;;  %vm271_vm13 = vmor %vm269_vm9, %vm270_vm10 }
  0x36   :  { %v266_v45 = vsub.f32 1.0, %v265_v42  ;;  %vm286_vm15 = vmor %vm284_vm11, %vm285_vm12 }
  0x37   :  { %v281_v48 = vsub.f32 1.0, %v280_v44 }
  0x38   :  { %v267_v50 = vmul.f32 %v470_v40, %v266_v45 }
  0x39   :  { %v282_v52 = vmul.f32 %v472_v41, %v281_v48 }
  0x3a   :  { %v268_v53 = vadd.f32 %v470_v40, %v267_v50 }
  0x3b   :  { %v283_v55 = vadd.f32 %v472_v41, %v282_v52 }
  0x3c   :  { %v272_v56 = vsel %vm271_vm13, %v470_v40, %v268_v53 }
  0x3d   :  { %v277_v57 = vsel %vm274_vm14, %v276_v51, %v272_v56  ;;  %v287_v58 = vsel %vm286_vm15, %v472_v41, %v283_v55 }
  0x3e   :  { %v292_v59 = vsel %vm289_vm1, %v291_v54, %v287_v58  ;;  %v294_v22 = vsub.f32 0.0, %v277_v57 }
  0x3f   :  { %v349_v60 = vpack.c.bf16 %v292_v59, %v277_v57  ;;  %v295_v19 = vsub.f32 0.0, %v292_v59 }
  0x40   :  { %v296_v28 = vadd.f32 1.0, %v294_v22  ;;  %v299_v39 = vmul.f32 -0.5, %v294_v22  ;;  %v302_v58 = vand.u32 2147483647, %v294_v22 }
  0x41   :  { %434 = vmatmul.msk.bf16.vlgmr.msra.gmra.mxu2 %vm314_vm2, %v349_v60  ;;  %v305_v27 = vadd.f32 1.0, %v295_v19  ;;  %v308_v38 = vmul.f32 -0.5, %v295_v19  ;;  %v311_v52 = vand.u32 2147483647, %v295_v19 }
  0x42   :  { %v300_v43 = vadd.f32 1.0, %v299_v39  ;;  %vm303_vm13 = vcmp.lt.f32.partialorder %v302_v58, 0.0004427343 }
  0x43   :  { %v309_v42 = vadd.f32 1.0, %v308_v38  ;;  %vm312_vm11 = vcmp.lt.f32.partialorder %v311_v52, 0.0004427343  ;;  %v133_v38 = vld [vmem:[%s646_s4] sm:$0xff]  ;;  %s536_s4 = smov [#allocation2]  }
  0x44   :  { %v301_v56 = vmul.f32 %v300_v43, %v294_v22  ;;  %v172_v39 = vperm.slane %v133_v38, 3  ;;  %s410_s8 = sshll.u32 %s536_s4, 4  ;;  %s411_s8 = int_to_ptr.vmem [resolvable:$true] %s410_s8 }
  0x45   :  { %v310_v51 = vmul.f32 %v309_v42, %v295_v19 }
  0x77   :  { %v30_v2 = vpop.xlane.xlu0 %29 }
  0x78   :  { %v34_v3 = vsub.f32 %v577_v0, %v30_v2 }
  0x7a   :  { %v36_v4 = vmul.f32 1.442695, %v34_v3 }
  0x7c   :  { %473 = vpow2.f32 %v36_v4 }
  0x7f   :  { %v33_v5 = vpop.xlane.xlu0 %32 }
  0x80   :  { %v35_v7 = vsub.f32 %v590_v6, %v33_v5  ;;  %v535_v6 = vmov 127  }
  0x81   :  { %455 = vset.pattern.permute.xlu2 %v535_v6  ;;  %456 = vset.pattern.permute.xlu0 %v535_v6 }
  0x82   :  { %v474_v8 = vpop.eup %473  ;;  %v38_v9 = vmul.f32 1.442695, %v35_v7 }
  0x83   :  { %v40_v10 = vsel %vm27_vm0, %v474_v8, 0.0 }
  0x84   :  { %475 = vpow2.f32 %v38_v9  ;;  %41 = vadd.xlane.f32.xlu1 %v40_v10 }
  0x8a   :  { %v610_v0 = vpop.eup %475 }
  0x8b   :  { %v43_v13 = vsel %vm27_vm0, %v610_v0, 0.0 }
  0x8c   :  { %44 = vadd.xlane.f32.xlu1 %v43_v13 }
  0xa5   :  { %165 = vperm.xlu1 %450, %v131_v61  }
  0xad   :  { %454 = vset.pattern.permute.xlu1 %v535_v6 }
  0xc4   :  { %v614_v14 = vpop.f32.mrf.mxu2 }
  0xc5   :  { %373 = vperm.xlu1 %454, %v614_v14  }
  0xcc   :  { %v617_v15 = vpop.f32.mrf.mxu2 }
  0xcd   :  { %378 = vperm.xlu2 %455, %v617_v15  }
  0xf7   :  { %v42_v17 = vpop.xlane.xlu1 %41 }
  0xf8   :  { %477 = vrcp.f32 %v42_v17  ;;  %v57_v24 = vand.u32 2147483648, %v42_v17  ;;  %v55_v26 = vand.u32 2147483647, %v42_v17  ;;  %vm51_vm4 = vweird.f32 %v42_v17 }
  0xfa   :  { %v58_v32 = vor.u32 1.1754944e-38, %v57_v24  ;;  %vm56_vm7 = vcmp.eq.f32.partialorder %v55_v26, 8.507059e+37 }
  0xfe   :  { %v478_v18 = vpop.eup %477 }
  0xff   :  { %v47_v20 = vmul.f32 %v478_v18, %v42_v17  ;;  %v45_v21 = vpop.xlane.xlu1 %44  ;;  %vm52_vm3 = vweird.f32 %v478_v18 }
 0x100   :  { %479 = vrcp.f32 %v45_v21  ;;  %vm53_vm6 = vmor %vm51_vm4, %vm52_vm3  ;;  %v71_v37 = vand.u32 2147483648, %v45_v21  ;;  %vm65_vm8 = vweird.f32 %v45_v21  ;;  %v69_v46 = vand.u32 2147483647, %v45_v21 }
 0x101   :  { %v48_v23 = vsub.f32 1.0, %v47_v20  ;;  %481 = vlog2.f32 %v305_v27 }
 0x102   :  { %483 = vlog2.f32 %v296_v28  ;;  %v72_v49 = vor.u32 1.1754944e-38, %v71_v37  ;;  %vm70_vm12 = vcmp.eq.f32.partialorder %v69_v46, 8.507059e+37 }
 0x103   :  { %v49_v25 = vmul.f32 %v478_v18, %v48_v23 }
 0x105   :  { %v50_v29 = vadd.f32 %v478_v18, %v49_v25 }
 0x106   :  { %v480_v31 = vpop.eup %479 }
 0x107   :  { %v54_v34 = vsel %vm53_vm6, %v478_v18, %v50_v29  ;;  %v61_v35 = vmul.f32 %v480_v31, %v45_v21  ;;  %v482_v44 = vpop.eup %481  ;;  %vm66_vm9 = vweird.f32 %v480_v31 }
 0x108   :  { %v59_v36 = vsel %vm56_vm7, %v58_v32, %v54_v34  ;;  %v484_v48 = vpop.eup %483  ;;  %v307_v50 = vmul.f32 0.6931472, %v482_v44  ;;  %vm67_vm10 = vmor %vm65_vm8, %vm66_vm9  ;;  %v137_v34 = vpop.permute.xlu2 %136 }
 0x109   :  { %v74_v40 = vmul.f32 %v474_v8, %v59_v36  ;;  %v62_v41 = vsub.f32 1.0, %v61_v35  ;;  %v298_v57 = vmul.f32 0.6931472, %v484_v48 }
 0x10a   :  { %v313_v60 = vsel %vm312_vm11, %v310_v51, %v307_v50 }
 0x10b   :  { %v63_v45 = vmul.f32 %v480_v31, %v62_v41  ;;  %v76_v47 = vsub.f32 1.0, %v74_v40  ;;  %v96_v55 = vadd.f32 1e-08, %v74_v40  ;;  %v318_v62 = vsel %vm314_vm2, %v313_v60, 0.0 }
 0x10c   :  { %319 = vadd.xlane.f32.xlu0 %v318_v62  ;;  %v304_v1 = vsel %vm303_vm13, %v301_v56, %v298_v57  ;;  %v78_v10 = vmul.f32 %v74_v40, %v74_v40  ;;  %v183_v40 = vperm.slane %v133_v38, 2 }
 0x10d   :  { %v64_v53 = vadd.f32 %v480_v31, %v63_v45  ;;  %v82_v54 = vadd.f32 1e-08, %v76_v47  ;;  %v315_v2 = vsel %vm314_vm2, %v304_v1, 0.0  ;;  %v92_v12 = vmul.f32 %v76_v47, %v76_v47  ;;  %v151_v47 = vpop.permute.xlu0 %150 }
 0x10e   :  { %316 = vadd.xlane.f32.xlu1 %v315_v2  ;;  %v80_v19 = vmul.f32 0.75, %v78_v10  ;;  %v157_v45 = vperm.slane %v133_v38, 1  ;;  %v381_v1 = vperm.slane %v133_v38, 4 }
 0x10f   :  { %v68_v59 = vsel %vm67_vm10, %v480_v31, %v64_v53  ;;  %485 = vlog2.f32 %v82_v54  ;;  %v94_v22 = vmul.f32 0.25, %v92_v12 }
 0x110   :  { %v73_v61 = vsel %vm70_vm12, %v72_v49, %v68_v59  ;;  %487 = vlog2.f32 %v96_v55  ;;  %v142_v35 = vpop.permute.xlu2 %141  ;;  %v190_v53 = vadd.f32 %v157_v45, %v151_v47  ;;  %v158_v10 = vsub.f32 %v151_v47, %v157_v45 }
 0x111   :  { %v75_v63 = vmul.f32 %v610_v0, %v73_v61 }
 0x113   :  { %v77_v3 = vsub.f32 1.0, %v75_v63  ;;  %v97_v4 = vadd.f32 1e-08, %v75_v63  ;;  %v79_v6 = vmul.f32 %v75_v63, %v75_v63 }
 0x115   :  { %v486_v5 = vpop.eup %485  ;;  %v83_v7 = vadd.f32 1e-08, %v77_v3  ;;  %489 = vlog2.f32 %v97_v4  ;;  %v93_v16 = vmul.f32 %v77_v3, %v77_v3  ;;  %v81_v24 = vmul.f32 0.75, %v79_v6 }
 0x116   :  { %v488_v8 = vpop.eup %487  ;;  %v85_v9 = vmul.f32 0.6931472, %v486_v5  ;;  %v144_v3 = vperm.slane %v133_v38, 0 }
 0x117   :  { %491 = vlog2.f32 %v83_v7  ;;  %v99_v11 = vmul.f32 0.6931472, %v488_v8  ;;  %v95_v27 = vmul.f32 0.25, %v93_v16  ;;  %v166_v41 = vpop.permute.xlu1 %165 }
 0x118   :  { %v88_v0 = vsub.f32 0.0, %v85_v9  ;;  %v170_v36 = vpop.permute.xlu2 %169  ;;  %v173_v43 = vmin.f32 %v166_v41, %v172_v39  ;;  %v196_v49 = vmax.f32 %v166_v41, %v172_v39  ;;  %v145_v9 = vsub.f32 %v137_v34, %v144_v3 }
 0x119   :  { %v102_v21 = vsub.f32 0.0, %v99_v11  ;;  %v174_v50 = vmin.f32 %v170_v36, %v172_v39  ;;  %v197_v59 = vmax.f32 %v170_v36, %v172_v39 }
 0x11a   :  { %v90_v26 = vmul.f32 %v88_v0, %v80_v19  ;;  %v160_v19 = vand.u32 2147483647, %v158_v10 }
 0x11b   :  { %v490_v13 = vpop.eup %489  ;;  %v104_v29 = vmul.f32 %v102_v21, %v94_v22 }
 0x11c   :  { %v101_v18 = vmul.f32 0.6931472, %v490_v13  ;;  %v344_v13 = vpop.f32.mrf.mxu1 }
 0x11d   :  { %v492_v17 = vpop.eup %491  ;;  %v106_v31 = vsub.f32 %v104_v29, %v90_v26 }
 0x11e   :  { %v87_v20 = vmul.f32 0.6931472, %v492_v17  ;;  %v103_v23 = vsub.f32 0.0, %v101_v18  ;;  %v147_v18 = vand.u32 2147483647, %v145_v9 }
 0x120   :  { %v89_v25 = vsub.f32 0.0, %v87_v20  ;;  %v105_v30 = vmul.f32 %v103_v23, %v95_v27  ;;  %v177_v37 = vpop.permute.xlu2 %176  ;;  %v386_v23 = vmul.f32 2.0, %v614_v14  ;;  %v162_v29 = vadd.f32 %v160_v19, %v147_v18 }
 0x121   :  { %v184_v42 = vmax.f32 %v177_v37, %v183_v40  ;;  %v198_v48 = vmin.f32 %v177_v37, %v183_v40 }
 0x122   :  { %v91_v28 = vmul.f32 %v89_v25, %v81_v24  ;;  %v146_v24 = vsub.f32 %v142_v35, %v144_v3  ;;  %v388_v37 = vadd.f32 1.0, %v386_v23 }
 0x123   :  { %v186_v46 = vsub.f32 %v173_v43, %v184_v42  ;;  %v200_v55 = vsub.f32 %v196_v49, %v198_v48 }
 0x124   :  { %v107_v32 = vsub.f32 %v105_v30, %v91_v28  ;;  %v346_v38 = vpop.f32.mrf.mxu1 }
 0x125   :  { %v188_v52 = vmax.f32 %v186_v46, 0.0  ;;  %v202_v61 = vmax.f32 %v200_v55, 1e-07  ;;  %v387_v46 = vmul.f32 2.0, %v617_v15 }
 0x126   :  { %v108_v33 = vpack.c.bf16 %v107_v32, %v106_v31 }
 0x127   :  { %v192_v57 = vsub.f32 %v190_v53, %v188_v52  ;;  %493 = vrcp.f32 %v202_v61 }
 0x128   :  { %424 = vmatmul.msk.bf16.vlgmr.msra.gmra.mxu0 %vm27_vm0, %v108_v33  ;;  %v181_v44 = vpop.permute.xlu2 %180 }
 0x129   :  { %v185_v51 = vmax.f32 %v181_v44, %v183_v40  ;;  %v199_v60 = vmin.f32 %v181_v44, %v183_v40  ;;  %v194_v2 = vmax.f32 %v192_v57, 1e-07  ;;  %v148_v40 = vand.u32 2147483647, %v146_v24 }
 0x12b   :  { %v634_v56 = vsub.f32 %v174_v50, %v185_v51  ;;  %v201_v7 = vsub.f32 %v197_v59, %v199_v60  ;;  %495 = vrcp.f32 %v194_v2 }
 0x12d   :  { %v189_v62 = vmax.f32 %v634_v56, 0.0  ;;  %v203_v6 = vmax.f32 %v201_v7, 1e-07  ;;  %v494_v17 = vpop.eup %493  ;;  %v389_v56 = vadd.f32 1.0, %v387_v46 }
 0x12e   :  { %v210_v27 = vmul.f32 %v494_v17, %v194_v2 }
 0x130   :  { %v155_v58 = vpop.permute.xlu2 %154 }
 0x131   :  { %v191_v63 = vadd.f32 %v157_v45, %v155_v58  ;;  %v496_v21 = vpop.eup %495  ;;  %v159_v25 = vsub.f32 %v155_v58, %v157_v45 }
 0x132   :  { %v206_v30 = vmul.f32 %v496_v21, %v188_v52 }
 0x133   :  { %v193_v8 = vsub.f32 %v191_v63, %v189_v62  ;;  %v161_v41 = vand.u32 2147483647, %v159_v25 }
 0x134   :  { %v212_v42 = vadd.f32 %v210_v27, %v206_v30 }
 0x135   :  { %v195_v16 = vmax.f32 %v193_v8, 1e-07  ;;  %v163_v49 = vadd.f32 %v161_v41, %v148_v40 }
 0x137   :  { %v374_v54 = vpop.permute.xlu1 %373 }
 0x138   :  { %v382_v4 = vadd.f32 %v381_v1, %v374_v54  ;;  %v379_v0 = vpop.permute.xlu2 %378 }
 0x139   :  { %v383_v22 = vadd.f32 %v381_v1, %v379_v0 }
 0x13a   :  { %v384_v12 = vadd.f32 1.0, %v382_v4 }
 0x13b   :  { %v385_v31 = vadd.f32 1.0, %v383_v22 }
 0x13c   :  { %497 = vrcp.f32 %v384_v12 }
 0x13d   :  { %499 = vrcp.f32 %v203_v6 }
 0x13e   :  { %501 = vrcp.f32 %v195_v16 }
 0x13f   :  { %503 = vrcp.f32 %v385_v31 }
 0x142   :  { %v498_v36 = vpop.eup %497 }
 0x143   :  { %v500_v39 = vpop.eup %499  ;;  %v392_v44 = vmul.f32 %v498_v36, %v388_v37 }
 0x144   :  { %v502_v35 = vpop.eup %501  ;;  %v211_v47 = vmul.f32 %v500_v39, %v195_v16 }
 0x145   :  { %v207_v50 = vmul.f32 %v502_v35, %v189_v62  ;;  %v504_v55 = vpop.eup %503 }
 0x146   :  { %v393_v59 = vmul.f32 %v504_v55, %v389_v56 }
 0x147   :  { %v213_v57 = vadd.f32 %v211_v47, %v207_v50 }
 0x17f   :  { %v320_v26 = vpop.xlane.xlu0 %319 }
 0x180   :  { %v322_v33 = vsub.f32 0.0, %v320_v26 }
 0x181   :  { %v317_v5 = vpop.xlane.xlu1 %316 }
 0x182   :  { %v321_v11 = vsub.f32 0.0, %v317_v5  ;;  %v368_v43 = vsub.f32 %v322_v33, %v346_v38 }
 0x184   :  { %v367_v20 = vsub.f32 %v321_v11, %v344_v13  ;;  %v370_v52 = vmul.f32 0.0625, %v368_v43 }
 0x186   :  { %v369_v28 = vmul.f32 0.0625, %v367_v20 }
 0x1a5   :  { %v126_v32 = vpop.f32.mrf.mxu0 }
 0x1a6   :  { %v394_v34 = vadd.f32 %v162_v29, %v126_v32 }
 0x1a8   :  { %v396_v14 = vadd.f32 %v394_v34, %v369_v28 }
 0x1aa   :  { %v398_v45 = vsub.f32 %v396_v14, %v212_v42 }
 0x1ac   :  { %v400_v48 = vsub.f32 %v398_v45, %v392_v44 }
 0x1ad   :  { %v128_v51 = vpop.f32.mrf.mxu0 }
 0x1ae   :  { %v402_v53 = vadd.f32 2.0, %v400_v48  ;;  %v395_v54 = vadd.f32 %v163_v49, %v128_v51 }
 0x1b0   :  { %404 = vst [vmem:[#allocation2] sm:$0xff] %v402_v53  ;;  %v397_v58 = vadd.f32 %v395_v54, %v370_v52 }
 0x1b2   :  { %v399_v60 = vsub.f32 %v397_v58, %v213_v57 }
 0x1b4   :  { %v401_v15 = vsub.f32 %v399_v60, %v393_v59 }
 0x1b6   :  { %v403_v61 = vadd.f32 2.0, %v401_v15 }
 0x1b8   :  { %405 = vst [vmem:[#allocation2 + $0x8] sm:$0xff] %v403_v61 }
 0x1b9   :  { %418 = dma.vmem_to_hbm [thread:$0]  %s411_s8, 256, %s413_s11, [#allocation3], %s537_s12, %s537_s12, %s538_s13  }
 0x1ba   :  { %529 = dma.done.wait [#allocation3], 256  }
 0x1bb   :  { %530 = vsyncadd [#allocation3], 4294967040 }
 0x1bc   :  { %423 = vsyncpa [#allocation3], 1 }

</bundles_post_ra>
